<compile_context>
chip_gen: v5e
topology: v5e:2x2
jax: 0.10.0
libtpu: 0.0.40
codegen_flags: <defaults>
</compile_context>

<pallas_src>
import math

import jax
import jax.numpy as jnp
from jax import lax
from jax.experimental import pallas as pl
from jax.experimental.pallas import tpu as pltpu


# ----------------------------------------------------------------------------
# model hyperparameters (SeqXGPTModel defaults)
# ----------------------------------------------------------------------------
D_MODEL = 128          # embedding_size
NUM_HEADS = 4
HEAD_DIM = D_MODEL // NUM_HEADS
FFN = 64               # intermediate_size
NUM_LAYERS = 2
NUM_LABELS = 5
PATCH_SIZE = 3
C_PAD = 128            # lane-dense classifier output width (>= NUM_LABELS)
LN_EPS = 1e-5
NEG_INF = -1e9
MAX_BB = 8             # sequences fused per grid step (keeps blocks 8-aligned)


def _ln(v, g, b, eps=LN_EPS):
    mu = jnp.mean(v, axis=-1, keepdims=True)
    var = jnp.mean(jnp.square(v - mu), axis=-1, keepdims=True)
    return (v - mu) * lax.rsqrt(var + eps) * g + b


# ----------------------------------------------------------------------------
# fused Pallas kernel: patch_average + PE + LN + 2 encoder layers + classifier
#   x_ref   : (BB*Lp, D)   raw (zero-padded) inputs of BB sequences, flattened
#   avg_ref : (N, BB*Lp)   block-diagonal patch-averaging matrix, N = BB*P
#   m_ref   : (1, N, N)    additive attention mask (block-diag + key padding)
#   pe_ref  : (N, D)       positional encoding tiled BB times
#   o_ref   : (1, N, C_PAD) classifier logits (lane-dense)
# ----------------------------------------------------------------------------
def _fused_kernel(x_ref, avg_ref, m_ref, pe_ref, ng_ref, nb_ref,
                  wqkv_ref, bqkv_ref, wo_ref, bo_ref,
                  ln1g_ref, ln1b_ref, w1_ref, b1_ref, w2_ref, b2_ref,
                  ln2g_ref, ln2b_ref, cw_ref, cb_ref, o_ref):
    f32 = jnp.float32
    bf16 = jnp.bfloat16
    scale = 1.0 / math.sqrt(HEAD_DIM)

    xb = x_ref[...]                                              # (BB*Lp, D) f32
    # patch_average fused as one MXU matmul: (N, BB*Lp) @ (BB*Lp, D) -> (N, D)
    xp = jnp.dot(avg_ref[...], xb, preferred_element_type=f32)
    h = _ln(xp + pe_ref[...], ng_ref[...], nb_ref[...])          # (N, D) f32
    madd = m_ref[0]                                              # (N, N) additive mask

    for l in range(NUM_LAYERS):                                  # static unroll (2 layers)
        # ---- self-attention (batched heads, bf16 operands, f32 accumulate) ----
        qkv = jnp.dot(h.astype(bf16), wqkv_ref[l],
                      preferred_element_type=f32) + bqkv_ref[l]            # (N, 3D)

        def heads(t):  # (N, D) -> (H, N, hd) via static lane slices + leading stack
            return jnp.stack(
                [t[:, i * HEAD_DIM:(i + 1) * HEAD_DIM] for i in range(NUM_HEADS)],
                axis=0)

        q = heads(qkv[:, 0:D_MODEL]).astype(bf16)
        k = heads(qkv[:, D_MODEL:2 * D_MODEL]).astype(bf16)
        v = heads(qkv[:, 2 * D_MODEL:3 * D_MODEL]).astype(bf16)

        s = jnp.einsum('hqd,hkd->hqk', q, k,
                       preferred_element_type=f32) * scale                 # (H, N, N) f32
        # block-diagonal mask: queries only see keys of their own sequence and
        # only valid (non-padded) key patches.
        s = s + madd[None]
        # fully masked query rows (padded patches / padded batch slots) become a
        # uniform softmax; their outputs are overwritten with -1 preds outside.
        s = s - jnp.max(s, axis=-1, keepdims=True)
        e = jnp.exp(s)
        pr = e * pl.reciprocal(jnp.sum(e, axis=-1, keepdims=True), approx=True)
        ctx = jnp.einsum('hqk,hkd->hqd', pr.astype(bf16), v,
                         preferred_element_type=f32)                       # (H, N, hd)
        attn = jnp.concatenate([ctx[i] for i in range(NUM_HEADS)], axis=-1)  # (N, D)
        attn = jnp.dot(attn.astype(bf16), wo_ref[l],
                       preferred_element_type=f32) + bo_ref[l]
        h = _ln(h + attn, ln1g_ref[l], ln1b_ref[l])                        # post-norm 1

        # ---- feed-forward (relu) ----
        ff = jnp.maximum(
            jnp.dot(h.astype(bf16), w1_ref[l], preferred_element_type=f32) + b1_ref[l],
            0.0)
        ff = jnp.dot(ff.astype(bf16), w2_ref[l],
                     preferred_element_type=f32) + b2_ref[l]
        h = _ln(h + ff, ln2g_ref[l], ln2b_ref[l])                          # post-norm 2

    # classifier, lane-dense (C padded to 128; sliced to NUM_LABELS outside)
    o_ref[0] = jnp.dot(h.astype(bf16), cw_ref[...],
                       preferred_element_type=f32) + cb_ref[...]


def fused_transformer(x_flat, avg_bd, mask_add, pe_tile, params, *, nb, bb, P, Lp):
    N = bb * P
    rows = bb * Lp
    return pl.pallas_call(
        _fused_kernel,
        out_shape=jax.ShapeDtypeStruct((nb, N, C_PAD), jnp.float32),
        grid=(nb,),
        in_specs=[
            pl.BlockSpec((rows, D_MODEL), lambda b: (b, 0)),                # padded raw input
            pl.BlockSpec((N, rows), lambda b: (0, 0)),                      # block-diag avg matrix
            pl.BlockSpec((1, N, N), lambda b: (b, 0, 0)),                   # additive attn mask
            pl.BlockSpec((N, D_MODEL), lambda b: (0, 0)),                   # tiled pos. encoding
            pl.BlockSpec((1, D_MODEL), lambda b: (0, 0)),                   # input LN gamma
            pl.BlockSpec((1, D_MODEL), lambda b: (0, 0)),                   # input LN beta
            pl.BlockSpec((NUM_LAYERS, D_MODEL, 3 * D_MODEL), lambda b: (0, 0, 0)),  # Wqkv^T (bf16)
            pl.BlockSpec((NUM_LAYERS, 1, 3 * D_MODEL), lambda b: (0, 0, 0)),        # bqkv
            pl.BlockSpec((NUM_LAYERS, D_MODEL, D_MODEL), lambda b: (0, 0, 0)),      # Wo^T (bf16)
            pl.BlockSpec((NUM_LAYERS, 1, D_MODEL), lambda b: (0, 0, 0)),            # bo
            pl.BlockSpec((NUM_LAYERS, 1, D_MODEL), lambda b: (0, 0, 0)),            # ln1 gamma
            pl.BlockSpec((NUM_LAYERS, 1, D_MODEL), lambda b: (0, 0, 0)),            # ln1 beta
            pl.BlockSpec((NUM_LAYERS, D_MODEL, FFN), lambda b: (0, 0, 0)),          # W1^T (bf16)
            pl.BlockSpec((NUM_LAYERS, 1, FFN), lambda b: (0, 0, 0)),                # b1
            pl.BlockSpec((NUM_LAYERS, FFN, D_MODEL), lambda b: (0, 0, 0)),          # W2^T (bf16)
            pl.BlockSpec((NUM_LAYERS, 1, D_MODEL), lambda b: (0, 0, 0)),            # b2
            pl.BlockSpec((NUM_LAYERS, 1, D_MODEL), lambda b: (0, 0, 0)),            # ln2 gamma
            pl.BlockSpec((NUM_LAYERS, 1, D_MODEL), lambda b: (0, 0, 0)),            # ln2 beta
            pl.BlockSpec((D_MODEL, C_PAD), lambda b: (0, 0)),               # classifier W^T
            pl.BlockSpec((1, C_PAD), lambda b: (0, 0)),                     # classifier b
        ],
        out_specs=pl.BlockSpec((1, N, C_PAD), lambda b: (b, 0, 0)),
        compiler_params=pltpu.CompilerParams(
            dimension_semantics=("parallel",)),   # batch blocks split across TCs on v7x
    )(x_flat, avg_bd, mask_add, pe_tile,
      params["ln_in_g"], params["ln_in_b"],
      params["wqkv_t"], params["bqkv"], params["wo_t"], params["bo"],
      params["ln1_g"], params["ln1_b"], params["w1_t"], params["b1"],
      params["w2_t"], params["b2"], params["ln2_g"], params["ln2_b"],
      params["cls_w_t"], params["cls_b"])


# ----------------------------------------------------------------------------
# glue: params, positional encoding, end-to-end forward
# ----------------------------------------------------------------------------
def get_positional_encoding(seq_length, embedding_size):
    position = jnp.arange(seq_length, dtype=jnp.float32)[:, None]
    div_term = jnp.exp(jnp.arange(0, embedding_size, 2, dtype=jnp.float32)
                       * -(math.log(10000.0) / embedding_size))
    pe = jnp.zeros((seq_length, embedding_size), jnp.float32)
    pe = pe.at[:, 0::2].set(jnp.sin(position * div_term))
    pe = pe.at[:, 1::2].set(jnp.cos(position * div_term))
    return pe                                                # (seq, emb)


def init_params(key, num_labels=NUM_LABELS):
    keys = iter(jax.random.split(key, 16))

    def rnd(shape, scale=0.05):
        # matmul weights stored in bf16 (MXU-friendly, halves weight DMA)
        return (jax.random.normal(next(keys), shape, jnp.float32) * scale
                ).astype(jnp.bfloat16)

    p = {
        "ln_in_g": jnp.ones((1, D_MODEL), jnp.float32),
        "ln_in_b": jnp.zeros((1, D_MODEL), jnp.float32),
        "wqkv_t": rnd((NUM_LAYERS, D_MODEL, 3 * D_MODEL)),
        "bqkv":   jnp.zeros((NUM_LAYERS, 1, 3 * D_MODEL), jnp.float32),
        "wo_t":   rnd((NUM_LAYERS, D_MODEL, D_MODEL)),
        "bo":     jnp.zeros((NUM_LAYERS, 1, D_MODEL), jnp.float32),
        "ln1_g":  jnp.ones((NUM_LAYERS, 1, D_MODEL), jnp.float32),
        "ln1_b":  jnp.zeros((NUM_LAYERS, 1, D_MODEL), jnp.float32),
        "w1_t":   rnd((NUM_LAYERS, D_MODEL, FFN)),
        "b1":     jnp.zeros((NUM_LAYERS, 1, FFN), jnp.float32),
        "w2_t":   rnd((NUM_LAYERS, FFN, D_MODEL)),
        "b2":     jnp.zeros((NUM_LAYERS, 1, D_MODEL), jnp.float32),
        "ln2_g":  jnp.ones((NUM_LAYERS, 1, D_MODEL), jnp.float32),
        "ln2_b":  jnp.zeros((NUM_LAYERS, 1, D_MODEL), jnp.float32),
    }
    cls_w = (jax.random.normal(next(keys), (D_MODEL, num_labels), jnp.float32)
             * 0.05).astype(jnp.bfloat16)
    p["cls_w_t"] = jnp.zeros((D_MODEL, C_PAD), jnp.bfloat16).at[:, :num_labels].set(cls_w)
    p["cls_b"] = jnp.zeros((1, C_PAD), jnp.float32)
    return p


def forward(params, x, labels, num_labels=NUM_LABELS, patch_size=PATCH_SIZE):
    """x: (B, L, D_MODEL) float32, labels: (B, L) int32 with -1 = padding."""
    B, L, D = x.shape
    P = -(-L // patch_size)                 # ceil(L / patch_size)
    Lp = P * patch_size

    # batch blocking: fuse up to MAX_BB sequences per grid step
    BB = B if B <= MAX_BB else MAX_BB
    nb = -(-B // BB)
    B_pad = nb * BB
    N = BB * P

    # patch_average: PyTorch zero-pads the tail and means over the full patch
    # (including zeros). Implemented in-kernel as a block-diagonal (N, BB*Lp)
    # averaging matmul over the flattened raw input.
    x_pad = jnp.pad(x, ((0, B_pad - B), (0, Lp - L), (0, 0)))
    x_flat = x_pad.reshape(B_pad * Lp, D)

    # patch_mask: a patch is valid if any token in it is valid
    mask = labels > -1
    mask_p = jnp.pad(mask, ((0, B_pad - B), (0, Lp - L)), constant_values=False)
    patch_valid = jnp.any(mask_p.reshape(B_pad, P, patch_size), axis=-1)   # (B_pad, P)

    # additive attention mask for each batch block: same-sequence & valid key
    qseq = jnp.arange(N) // P
    same_seq = qseq[:, None] == qseq[None, :]                              # (N, N)
    key_valid = patch_valid.reshape(nb, N)                                 # (nb, N)
    allowed = same_seq[None, :, :] & key_valid[:, None, :]
    mask_add = jnp.where(allowed, 0.0, NEG_INF).astype(jnp.float32)        # (nb, N, N)

    pe = get_positional_encoding(P, D)                                     # (P, D)
    pe_tile = jnp.tile(pe, (BB, 1))                                        # (N, D)

    avg = jnp.repeat(jnp.eye(P, dtype=jnp.float32), patch_size, axis=1) / patch_size
    avg_bd = jnp.kron(jnp.eye(BB, dtype=jnp.float32), avg)                 # (N, BB*Lp)

    logits_blk = fused_transformer(x_flat, avg_bd, mask_add, pe_tile, params,
                                   nb=nb, bb=BB, P=P, Lp=Lp)               # (nb, N, 128)
    logits_pad = logits_blk.reshape(B_pad, P, C_PAD)
    logits = logits_pad[:B, :, :num_labels]

    # TODO(synk): ConditionalRandomField.viterbi_decode definition is not provided;
    # trans_m is zeroed in __init__, so decode reduces to per-step argmax here.
    preds = jnp.where(patch_valid[:B],
                      jnp.argmax(logits, axis=-1).astype(jnp.int32), -1)
    return {"preds": preds, "logits": logits}


if __name__ == "__main__":
    B, L = 2, 16
    key = jax.random.PRNGKey(0)
    kx, kp = jax.random.split(key)
    x = jax.random.normal(kx, (B, L, D_MODEL), jnp.float32)
    pos = jnp.arange(L)[None, :]
    valid_len = jnp.array([[L], [L - 5]])                 # second sequence padded
    labels = jnp.where(pos < valid_len, pos % NUM_LABELS, -1).astype(jnp.int32)

    params = init_params(kp)
    out = jax.jit(forward)(params, x, labels)
    jax.block_until_ready(out["logits"])
    jax.block_until_ready(out["preds"])

    P = -(-L // PATCH_SIZE)
    assert out["logits"].shape == (B, P, NUM_LABELS)
    assert out["preds"].shape == (B, P)
    assert bool(jnp.all(jnp.isfinite(out["logits"])))
    print("KERNEL_OK")
</pallas_src>

<mosaic_0001>
module attributes {stable_mosaic.version = 11 : i64} {
  func.func @_fused_kernel(%arg0: i32, %arg1: memref<36x128xf32, #tpu.memory_space<vmem>>, %arg2: memref<12x36xf32, #tpu.memory_space<vmem>>, %arg3: memref<1x12x12xf32, #tpu.memory_space<vmem>>, %arg4: memref<12x128xf32, #tpu.memory_space<vmem>>, %arg5: memref<1x128xf32, #tpu.memory_space<vmem>>, %arg6: memref<1x128xf32, #tpu.memory_space<vmem>>, %arg7: memref<2x128x384xbf16, #tpu.memory_space<vmem>>, %arg8: memref<2x1x384xf32, #tpu.memory_space<vmem>>, %arg9: memref<2x128x128xbf16, #tpu.memory_space<vmem>>, %arg10: memref<2x1x128xf32, #tpu.memory_space<vmem>>, %arg11: memref<2x1x128xf32, #tpu.memory_space<vmem>>, %arg12: memref<2x1x128xf32, #tpu.memory_space<vmem>>, %arg13: memref<2x128x64xbf16, #tpu.memory_space<vmem>>, %arg14: memref<2x1x64xf32, #tpu.memory_space<vmem>>, %arg15: memref<2x64x128xbf16, #tpu.memory_space<vmem>>, %arg16: memref<2x1x128xf32, #tpu.memory_space<vmem>>, %arg17: memref<2x1x128xf32, #tpu.memory_space<vmem>>, %arg18: memref<2x1x128xf32, #tpu.memory_space<vmem>>, %arg19: memref<128x128xbf16, #tpu.memory_space<vmem>>, %arg20: memref<1x128xf32, #tpu.memory_space<vmem>>, %arg21: memref<1x12x128xf32, #tpu.memory_space<vmem>>) attributes {dimension_semantics = [#tpu.dimension_semantics<parallel>], iteration_bounds = array<i64: 1>, scalar_prefetch = 0 : i64, scratch_operands = 0 : i64, tpu.core_type = #tpu.core_type<tc>, window_params = [{transform_indices = @transform_0, window_bounds = array<i64: 36, 128>}, {pipeline_mode = #tpu.pipeline_mode<synchronous>, transform_indices = @transform_1, window_bounds = array<i64: 12, 36>}, {transform_indices = @transform_2, window_bounds = array<i64: 1, 12, 12>}, {pipeline_mode = #tpu.pipeline_mode<synchronous>, transform_indices = @transform_3, window_bounds = array<i64: 12, 128>}, {pipeline_mode = #tpu.pipeline_mode<synchronous>, transform_indices = @transform_4, window_bounds = array<i64: 1, 128>}, {pipeline_mode = #tpu.pipeline_mode<synchronous>, transform_indices = @transform_5, window_bounds = array<i64: 1, 128>}, {pipeline_mode = #tpu.pipeline_mode<synchronous>, transform_indices = @transform_6, window_bounds = array<i64: 2, 128, 384>}, {pipeline_mode = #tpu.pipeline_mode<synchronous>, transform_indices = @transform_7, window_bounds = array<i64: 2, 1, 384>}, {pipeline_mode = #tpu.pipeline_mode<synchronous>, transform_indices = @transform_8, window_bounds = array<i64: 2, 128, 128>}, {pipeline_mode = #tpu.pipeline_mode<synchronous>, transform_indices = @transform_9, window_bounds = array<i64: 2, 1, 128>}, {pipeline_mode = #tpu.pipeline_mode<synchronous>, transform_indices = @transform_10, window_bounds = array<i64: 2, 1, 128>}, {pipeline_mode = #tpu.pipeline_mode<synchronous>, transform_indices = @transform_11, window_bounds = array<i64: 2, 1, 128>}, {pipeline_mode = #tpu.pipeline_mode<synchronous>, transform_indices = @transform_12, window_bounds = array<i64: 2, 128, 64>}, {pipeline_mode = #tpu.pipeline_mode<synchronous>, transform_indices = @transform_13, window_bounds = array<i64: 2, 1, 64>}, {pipeline_mode = #tpu.pipeline_mode<synchronous>, transform_indices = @transform_14, window_bounds = array<i64: 2, 64, 128>}, {pipeline_mode = #tpu.pipeline_mode<synchronous>, transform_indices = @transform_15, window_bounds = array<i64: 2, 1, 128>}, {pipeline_mode = #tpu.pipeline_mode<synchronous>, transform_indices = @transform_16, window_bounds = array<i64: 2, 1, 128>}, {pipeline_mode = #tpu.pipeline_mode<synchronous>, transform_indices = @transform_17, window_bounds = array<i64: 2, 1, 128>}, {pipeline_mode = #tpu.pipeline_mode<synchronous>, transform_indices = @transform_18, window_bounds = array<i64: 128, 128>}, {pipeline_mode = #tpu.pipeline_mode<synchronous>, transform_indices = @transform_19, window_bounds = array<i64: 1, 128>}, {transform_indices = @transform_20, window_bounds = array<i64: 1, 12, 128>}]} {
    %c0 = arith.constant 0 : index
    %c0_0 = arith.constant 0 : index
    %0 = vector.load %arg1[%c0, %c0_0] : memref<36x128xf32, #tpu.memory_space<vmem>>, vector<36x128xf32>
    %c0_1 = arith.constant 0 : index
    %c0_2 = arith.constant 0 : index
    %1 = vector.load %arg2[%c0_1, %c0_2] : memref<12x36xf32, #tpu.memory_space<vmem>>, vector<12x36xf32>
    %cst = arith.constant dense<0.000000e+00> : vector<12x128xf32>
    %2 = tpu.matmul %1, %0, %cst {dimension_numbers = #tpu.dot_dimension_numbers<[1], [0], [0], [1], [0, 0, 1, 1], [], []>} : vector<12x36xf32>, vector<36x128xf32>, vector<12x128xf32> -> vector<12x128xf32>
    %c0_3 = arith.constant 0 : index
    %c0_4 = arith.constant 0 : index
    %3 = vector.load %arg4[%c0_3, %c0_4] : memref<12x128xf32, #tpu.memory_space<vmem>>, vector<12x128xf32>
    %4 = arith.addf %2, %3 : vector<12x128xf32>
    %c0_5 = arith.constant 0 : index
    %c0_6 = arith.constant 0 : index
    %5 = vector.load %arg5[%c0_5, %c0_6] : memref<1x128xf32, #tpu.memory_space<vmem>>, vector<1x128xf32>
    %c0_7 = arith.constant 0 : index
    %c0_8 = arith.constant 0 : index
    %6 = vector.load %arg6[%c0_7, %c0_8] : memref<1x128xf32, #tpu.memory_space<vmem>>, vector<1x128xf32>
    %cst_9 = arith.constant dense<0.000000e+00> : vector<12xf32>
    %7 = vector.multi_reduction <add>, %4, %cst_9 [1] : vector<12x128xf32> to vector<12xf32>
    %8 = vector.shape_cast %7 : vector<12xf32> to vector<12x1xf32>
    %cst_10 = arith.constant 1.280000e+02 : f32
    %9 = vector.broadcast %cst_10 : f32 to vector<12x1xf32>
    %10 = arith.divf %8, %9 : vector<12x1xf32>
    %11 = vector.broadcast %10 : vector<12x1xf32> to vector<12x128xf32>
    %12 = arith.subf %4, %11 : vector<12x128xf32>
    %13 = arith.mulf %12, %12 : vector<12x128xf32>
    %cst_11 = arith.constant dense<0.000000e+00> : vector<12xf32>
    %14 = vector.multi_reduction <add>, %13, %cst_11 [1] : vector<12x128xf32> to vector<12xf32>
    %15 = vector.shape_cast %14 : vector<12xf32> to vector<12x1xf32>
    %cst_12 = arith.constant 1.280000e+02 : f32
    %16 = vector.broadcast %cst_12 : f32 to vector<12x1xf32>
    %17 = arith.divf %15, %16 : vector<12x1xf32>
    %18 = vector.broadcast %10 : vector<12x1xf32> to vector<12x128xf32>
    %19 = arith.subf %4, %18 : vector<12x128xf32>
    %cst_13 = arith.constant 9.99999974E-6 : f32
    %20 = vector.broadcast %cst_13 : f32 to vector<12x1xf32>
    %21 = arith.addf %17, %20 : vector<12x1xf32>
    %22 = math.rsqrt %21 : vector<12x1xf32>
    %23 = vector.broadcast %22 : vector<12x1xf32> to vector<12x128xf32>
    %24 = arith.mulf %19, %23 : vector<12x128xf32>
    %25 = vector.broadcast %5 : vector<1x128xf32> to vector<12x128xf32>
    %26 = arith.mulf %24, %25 : vector<12x128xf32>
    %27 = vector.broadcast %6 : vector<1x128xf32> to vector<12x128xf32>
    %28 = arith.addf %26, %27 : vector<12x128xf32>
    %c0_14 = arith.constant 0 : index
    %c0_15 = arith.constant 0 : index
    %c0_16 = arith.constant 0 : index
    %29 = vector.load %arg3[%c0_14, %c0_15, %c0_16] : memref<1x12x12xf32, #tpu.memory_space<vmem>>, vector<1x12x12xf32>
    %30 = vector.shape_cast %29 : vector<1x12x12xf32> to vector<12x12xf32>
    %31 = arith.truncf %28 : vector<12x128xf32> to vector<12x128xbf16>
    %c0_17 = arith.constant 0 : index
    %c0_18 = arith.constant 0 : index
    %c0_19 = arith.constant 0 : index
    %32 = vector.load %arg7[%c0_17, %c0_18, %c0_19] : memref<2x128x384xbf16, #tpu.memory_space<vmem>>, vector<1x128x384xbf16>
    %33 = vector.shape_cast %32 : vector<1x128x384xbf16> to vector<128x384xbf16>
    %cst_20 = arith.constant dense<0.000000e+00> : vector<12x384xf32>
    %34 = tpu.matmul %31, %33, %cst_20 {dimension_numbers = #tpu.dot_dimension_numbers<[1], [0], [0], [1], [0, 0, 1, 1], [], []>} : vector<12x128xbf16>, vector<128x384xbf16>, vector<12x384xf32> -> vector<12x384xf32>
    %c0_21 = arith.constant 0 : index
    %c0_22 = arith.constant 0 : index
    %c0_23 = arith.constant 0 : index
    %35 = vector.load %arg8[%c0_21, %c0_22, %c0_23] : memref<2x1x384xf32, #tpu.memory_space<vmem>>, vector<1x1x384xf32>
    %36 = vector.shape_cast %35 : vector<1x1x384xf32> to vector<1x384xf32>
    %37 = vector.broadcast %36 : vector<1x384xf32> to vector<12x384xf32>
    %38 = arith.addf %34, %37 : vector<12x384xf32>
    %39 = vector.extract_strided_slice %38 {offsets = [0, 0], sizes = [12, 128], strides = [1, 1]} : vector<12x384xf32> to vector<12x128xf32>
    %40 = vector.extract_strided_slice %39 {offsets = [0, 0], sizes = [12, 32], strides = [1, 1]} : vector<12x128xf32> to vector<12x32xf32>
    %41 = vector.extract_strided_slice %39 {offsets = [0, 32], sizes = [12, 32], strides = [1, 1]} : vector<12x128xf32> to vector<12x32xf32>
    %42 = vector.extract_strided_slice %39 {offsets = [0, 64], sizes = [12, 32], strides = [1, 1]} : vector<12x128xf32> to vector<12x32xf32>
    %43 = vector.extract_strided_slice %39 {offsets = [0, 96], sizes = [12, 32], strides = [1, 1]} : vector<12x128xf32> to vector<12x32xf32>
    %44 = vector.shape_cast %40 : vector<12x32xf32> to vector<1x12x32xf32>
    %45 = vector.shape_cast %41 : vector<12x32xf32> to vector<1x12x32xf32>
    %46 = vector.shape_cast %42 : vector<12x32xf32> to vector<1x12x32xf32>
    %47 = vector.shape_cast %43 : vector<12x32xf32> to vector<1x12x32xf32>
    %48 = tpu.concatenate %44, %45, %46, %47 in 0 : vector<1x12x32xf32>, vector<1x12x32xf32>, vector<1x12x32xf32>, vector<1x12x32xf32> -> vector<4x12x32xf32>
    %49 = arith.truncf %48 : vector<4x12x32xf32> to vector<4x12x32xbf16>
    %50 = vector.extract_strided_slice %38 {offsets = [0, 128], sizes = [12, 128], strides = [1, 1]} : vector<12x384xf32> to vector<12x128xf32>
    %51 = vector.extract_strided_slice %50 {offsets = [0, 0], sizes = [12, 32], strides = [1, 1]} : vector<12x128xf32> to vector<12x32xf32>
    %52 = vector.extract_strided_slice %50 {offsets = [0, 32], sizes = [12, 32], strides = [1, 1]} : vector<12x128xf32> to vector<12x32xf32>
    %53 = vector.extract_strided_slice %50 {offsets = [0, 64], sizes = [12, 32], strides = [1, 1]} : vector<12x128xf32> to vector<12x32xf32>
    %54 = vector.extract_strided_slice %50 {offsets = [0, 96], sizes = [12, 32], strides = [1, 1]} : vector<12x128xf32> to vector<12x32xf32>
    %55 = vector.shape_cast %51 : vector<12x32xf32> to vector<1x12x32xf32>
    %56 = vector.shape_cast %52 : vector<12x32xf32> to vector<1x12x32xf32>
    %57 = vector.shape_cast %53 : vector<12x32xf32> to vector<1x12x32xf32>
    %58 = vector.shape_cast %54 : vector<12x32xf32> to vector<1x12x32xf32>
    %59 = tpu.concatenate %55, %56, %57, %58 in 0 : vector<1x12x32xf32>, vector<1x12x32xf32>, vector<1x12x32xf32>, vector<1x12x32xf32> -> vector<4x12x32xf32>
    %60 = arith.truncf %59 : vector<4x12x32xf32> to vector<4x12x32xbf16>
    %61 = vector.extract_strided_slice %38 {offsets = [0, 256], sizes = [12, 128], strides = [1, 1]} : vector<12x384xf32> to vector<12x128xf32>
    %62 = vector.extract_strided_slice %61 {offsets = [0, 0], sizes = [12, 32], strides = [1, 1]} : vector<12x128xf32> to vector<12x32xf32>
    %63 = vector.extract_strided_slice %61 {offsets = [0, 32], sizes = [12, 32], strides = [1, 1]} : vector<12x128xf32> to vector<12x32xf32>
    %64 = vector.extract_strided_slice %61 {offsets = [0, 64], sizes = [12, 32], strides = [1, 1]} : vector<12x128xf32> to vector<12x32xf32>
    %65 = vector.extract_strided_slice %61 {offsets = [0, 96], sizes = [12, 32], strides = [1, 1]} : vector<12x128xf32> to vector<12x32xf32>
    %66 = vector.shape_cast %62 : vector<12x32xf32> to vector<1x12x32xf32>
    %67 = vector.shape_cast %63 : vector<12x32xf32> to vector<1x12x32xf32>
    %68 = vector.shape_cast %64 : vector<12x32xf32> to vector<1x12x32xf32>
    %69 = vector.shape_cast %65 : vector<12x32xf32> to vector<1x12x32xf32>
    %70 = tpu.concatenate %66, %67, %68, %69 in 0 : vector<1x12x32xf32>, vector<1x12x32xf32>, vector<1x12x32xf32>, vector<1x12x32xf32> -> vector<4x12x32xf32>
    %71 = arith.truncf %70 : vector<4x12x32xf32> to vector<4x12x32xbf16>
    "tpu.trace_start"() <{level = 10 : i32, message = "hqd,hkd->hqk"}> : () -> ()
    %cst_24 = arith.constant dense<0.000000e+00> : vector<4x12x12xf32>
    %72 = tpu.matmul %49, %60, %cst_24 {dimension_numbers = #tpu.dot_dimension_numbers<[2], [2], [1], [1], [0, 0, 0, 1, 1, 1], [0], [0]>} : vector<4x12x32xbf16>, vector<4x12x32xbf16>, vector<4x12x12xf32> -> vector<4x12x12xf32>
    "tpu.trace_stop"() : () -> ()
    %cst_25 = arith.constant 0.176776692 : f32
    %73 = vector.broadcast %cst_25 : f32 to vector<4x12x12xf32>
    %74 = arith.mulf %72, %73 : vector<4x12x12xf32>
    %75 = vector.shape_cast %30 : vector<12x12xf32> to vector<1x12x12xf32>
    %76 = vector.broadcast %75 : vector<1x12x12xf32> to vector<4x12x12xf32>
    %77 = arith.addf %74, %76 : vector<4x12x12xf32>
    %cst_26 = arith.constant dense<0xFF800000> : vector<4x12xf32>
    %78 = vector.multi_reduction <maximumf>, %77, %cst_26 [2] : vector<4x12x12xf32> to vector<4x12xf32>
    %79 = vector.shape_cast %78 : vector<4x12xf32> to vector<4x12x1xf32>
    %80 = vector.broadcast %79 : vector<4x12x1xf32> to vector<4x12x12xf32>
    %81 = arith.subf %77, %80 : vector<4x12x12xf32>
    %82 = math.exp %81 : vector<4x12x12xf32>
    %cst_27 = arith.constant dense<0.000000e+00> : vector<4x12xf32>
    %83 = vector.multi_reduction <add>, %82, %cst_27 [2] : vector<4x12x12xf32> to vector<4x12xf32>
    %84 = vector.shape_cast %83 : vector<4x12xf32> to vector<4x12x1xf32>
    %85 = tpu.reciprocal %84 {approx = true} : vector<4x12x1xf32> -> vector<4x12x1xf32>
    %86 = vector.broadcast %85 : vector<4x12x1xf32> to vector<4x12x12xf32>
    %87 = arith.mulf %82, %86 : vector<4x12x12xf32>
    %88 = arith.truncf %87 : vector<4x12x12xf32> to vector<4x12x12xbf16>
    "tpu.trace_start"() <{level = 10 : i32, message = "hqk,hkd->hqd"}> : () -> ()
    %cst_28 = arith.constant dense<0.000000e+00> : vector<4x12x32xf32>
    %89 = tpu.matmul %88, %71, %cst_28 {dimension_numbers = #tpu.dot_dimension_numbers<[2], [1], [1], [2], [0, 0, 0, 1, 1, 2], [0], [0]>} : vector<4x12x12xbf16>, vector<4x12x32xbf16>, vector<4x12x32xf32> -> vector<4x12x32xf32>
    "tpu.trace_stop"() : () -> ()
    %90 = vector.extract_strided_slice %89 {offsets = [0, 0, 0], sizes = [1, 12, 32], strides = [1, 1, 1]} : vector<4x12x32xf32> to vector<1x12x32xf32>
    %91 = vector.shape_cast %90 : vector<1x12x32xf32> to vector<12x32xf32>
    %92 = vector.extract_strided_slice %89 {offsets = [1, 0, 0], sizes = [1, 12, 32], strides = [1, 1, 1]} : vector<4x12x32xf32> to vector<1x12x32xf32>
    %93 = vector.shape_cast %92 : vector<1x12x32xf32> to vector<12x32xf32>
    %94 = vector.extract_strided_slice %89 {offsets = [2, 0, 0], sizes = [1, 12, 32], strides = [1, 1, 1]} : vector<4x12x32xf32> to vector<1x12x32xf32>
    %95 = vector.shape_cast %94 : vector<1x12x32xf32> to vector<12x32xf32>
    %96 = vector.extract_strided_slice %89 {offsets = [3, 0, 0], sizes = [1, 12, 32], strides = [1, 1, 1]} : vector<4x12x32xf32> to vector<1x12x32xf32>
    %97 = vector.shape_cast %96 : vector<1x12x32xf32> to vector<12x32xf32>
    %98 = tpu.concatenate %91, %93, %95, %97 in 1 : vector<12x32xf32>, vector<12x32xf32>, vector<12x32xf32>, vector<12x32xf32> -> vector<12x128xf32>
    %99 = arith.truncf %98 : vector<12x128xf32> to vector<12x128xbf16>
    %c0_29 = arith.constant 0 : index
    %c0_30 = arith.constant 0 : index
    %c0_31 = arith.constant 0 : index
    %100 = vector.load %arg9[%c0_29, %c0_30, %c0_31] : memref<2x128x128xbf16, #tpu.memory_space<vmem>>, vector<1x128x128xbf16>
    %101 = vector.shape_cast %100 : vector<1x128x128xbf16> to vector<128x128xbf16>
    %cst_32 = arith.constant dense<0.000000e+00> : vector<12x128xf32>
    %102 = tpu.matmul %99, %101, %cst_32 {dimension_numbers = #tpu.dot_dimension_numbers<[1], [0], [0], [1], [0, 0, 1, 1], [], []>} : vector<12x128xbf16>, vector<128x128xbf16>, vector<12x128xf32> -> vector<12x128xf32>
    %c0_33 = arith.constant 0 : index
    %c0_34 = arith.constant 0 : index
    %c0_35 = arith.constant 0 : index
    %103 = vector.load %arg10[%c0_33, %c0_34, %c0_35] : memref<2x1x128xf32, #tpu.memory_space<vmem>>, vector<1x1x128xf32>
    %104 = vector.shape_cast %103 : vector<1x1x128xf32> to vector<1x128xf32>
    %105 = vector.broadcast %104 : vector<1x128xf32> to vector<12x128xf32>
    %106 = arith.addf %102, %105 : vector<12x128xf32>
    %107 = arith.addf %28, %106 : vector<12x128xf32>
    %c0_36 = arith.constant 0 : index
    %c0_37 = arith.constant 0 : index
    %c0_38 = arith.constant 0 : index
    %108 = vector.load %arg11[%c0_36, %c0_37, %c0_38] : memref<2x1x128xf32, #tpu.memory_space<vmem>>, vector<1x1x128xf32>
    %109 = vector.shape_cast %108 : vector<1x1x128xf32> to vector<1x128xf32>
    %c0_39 = arith.constant 0 : index
    %c0_40 = arith.constant 0 : index
    %c0_41 = arith.constant 0 : index
    %110 = vector.load %arg12[%c0_39, %c0_40, %c0_41] : memref<2x1x128xf32, #tpu.memory_space<vmem>>, vector<1x1x128xf32>
    %111 = vector.shape_cast %110 : vector<1x1x128xf32> to vector<1x128xf32>
    %cst_42 = arith.constant dense<0.000000e+00> : vector<12xf32>
    %112 = vector.multi_reduction <add>, %107, %cst_42 [1] : vector<12x128xf32> to vector<12xf32>
    %113 = vector.shape_cast %112 : vector<12xf32> to vector<12x1xf32>
    %cst_43 = arith.constant 1.280000e+02 : f32
    %114 = vector.broadcast %cst_43 : f32 to vector<12x1xf32>
    %115 = arith.divf %113, %114 : vector<12x1xf32>
    %116 = vector.broadcast %115 : vector<12x1xf32> to vector<12x128xf32>
    %117 = arith.subf %107, %116 : vector<12x128xf32>
    %118 = arith.mulf %117, %117 : vector<12x128xf32>
    %cst_44 = arith.constant dense<0.000000e+00> : vector<12xf32>
    %119 = vector.multi_reduction <add>, %118, %cst_44 [1] : vector<12x128xf32> to vector<12xf32>
    %120 = vector.shape_cast %119 : vector<12xf32> to vector<12x1xf32>
    %cst_45 = arith.constant 1.280000e+02 : f32
    %121 = vector.broadcast %cst_45 : f32 to vector<12x1xf32>
    %122 = arith.divf %120, %121 : vector<12x1xf32>
    %123 = vector.broadcast %115 : vector<12x1xf32> to vector<12x128xf32>
    %124 = arith.subf %107, %123 : vector<12x128xf32>
    %cst_46 = arith.constant 9.99999974E-6 : f32
    %125 = vector.broadcast %cst_46 : f32 to vector<12x1xf32>
    %126 = arith.addf %122, %125 : vector<12x1xf32>
    %127 = math.rsqrt %126 : vector<12x1xf32>
    %128 = vector.broadcast %127 : vector<12x1xf32> to vector<12x128xf32>
    %129 = arith.mulf %124, %128 : vector<12x128xf32>
    %130 = vector.broadcast %109 : vector<1x128xf32> to vector<12x128xf32>
    %131 = arith.mulf %129, %130 : vector<12x128xf32>
    %132 = vector.broadcast %111 : vector<1x128xf32> to vector<12x128xf32>
    %133 = arith.addf %131, %132 : vector<12x128xf32>
    %134 = arith.truncf %133 : vector<12x128xf32> to vector<12x128xbf16>
    %c0_47 = arith.constant 0 : index
    %c0_48 = arith.constant 0 : index
    %c0_49 = arith.constant 0 : index
    %135 = vector.load %arg13[%c0_47, %c0_48, %c0_49] : memref<2x128x64xbf16, #tpu.memory_space<vmem>>, vector<1x128x64xbf16>
    %136 = vector.shape_cast %135 : vector<1x128x64xbf16> to vector<128x64xbf16>
    %cst_50 = arith.constant dense<0.000000e+00> : vector<12x64xf32>
    %137 = tpu.matmul %134, %136, %cst_50 {dimension_numbers = #tpu.dot_dimension_numbers<[1], [0], [0], [1], [0, 0, 1, 1], [], []>} : vector<12x128xbf16>, vector<128x64xbf16>, vector<12x64xf32> -> vector<12x64xf32>
    %c0_51 = arith.constant 0 : index
    %c0_52 = arith.constant 0 : index
    %c0_53 = arith.constant 0 : index
    %138 = vector.load %arg14[%c0_51, %c0_52, %c0_53] : memref<2x1x64xf32, #tpu.memory_space<vmem>>, vector<1x1x64xf32>
    %139 = vector.shape_cast %138 : vector<1x1x64xf32> to vector<1x64xf32>
    %140 = vector.broadcast %139 : vector<1x64xf32> to vector<12x64xf32>
    %141 = arith.addf %137, %140 : vector<12x64xf32>
    %cst_54 = arith.constant 0.000000e+00 : f32
    %142 = vector.broadcast %cst_54 : f32 to vector<12x64xf32>
    %143 = arith.maximumf %141, %142 : vector<12x64xf32>
    %144 = arith.truncf %143 : vector<12x64xf32> to vector<12x64xbf16>
    %c0_55 = arith.constant 0 : index
    %c0_56 = arith.constant 0 : index
    %c0_57 = arith.constant 0 : index
    %145 = vector.load %arg15[%c0_55, %c0_56, %c0_57] : memref<2x64x128xbf16, #tpu.memory_space<vmem>>, vector<1x64x128xbf16>
    %146 = vector.shape_cast %145 : vector<1x64x128xbf16> to vector<64x128xbf16>
    %cst_58 = arith.constant dense<0.000000e+00> : vector<12x128xf32>
    %147 = tpu.matmul %144, %146, %cst_58 {dimension_numbers = #tpu.dot_dimension_numbers<[1], [0], [0], [1], [0, 0, 1, 1], [], []>} : vector<12x64xbf16>, vector<64x128xbf16>, vector<12x128xf32> -> vector<12x128xf32>
    %c0_59 = arith.constant 0 : index
    %c0_60 = arith.constant 0 : index
    %c0_61 = arith.constant 0 : index
    %148 = vector.load %arg16[%c0_59, %c0_60, %c0_61] : memref<2x1x128xf32, #tpu.memory_space<vmem>>, vector<1x1x128xf32>
    %149 = vector.shape_cast %148 : vector<1x1x128xf32> to vector<1x128xf32>
    %150 = vector.broadcast %149 : vector<1x128xf32> to vector<12x128xf32>
    %151 = arith.addf %147, %150 : vector<12x128xf32>
    %152 = arith.addf %133, %151 : vector<12x128xf32>
    %c0_62 = arith.constant 0 : index
    %c0_63 = arith.constant 0 : index
    %c0_64 = arith.constant 0 : index
    %153 = vector.load %arg17[%c0_62, %c0_63, %c0_64] : memref<2x1x128xf32, #tpu.memory_space<vmem>>, vector<1x1x128xf32>
    %154 = vector.shape_cast %153 : vector<1x1x128xf32> to vector<1x128xf32>
    %c0_65 = arith.constant 0 : index
    %c0_66 = arith.constant 0 : index
    %c0_67 = arith.constant 0 : index
    %155 = vector.load %arg18[%c0_65, %c0_66, %c0_67] : memref<2x1x128xf32, #tpu.memory_space<vmem>>, vector<1x1x128xf32>
    %156 = vector.shape_cast %155 : vector<1x1x128xf32> to vector<1x128xf32>
    %cst_68 = arith.constant dense<0.000000e+00> : vector<12xf32>
    %157 = vector.multi_reduction <add>, %152, %cst_68 [1] : vector<12x128xf32> to vector<12xf32>
    %158 = vector.shape_cast %157 : vector<12xf32> to vector<12x1xf32>
    %cst_69 = arith.constant 1.280000e+02 : f32
    %159 = vector.broadcast %cst_69 : f32 to vector<12x1xf32>
    %160 = arith.divf %158, %159 : vector<12x1xf32>
    %161 = vector.broadcast %160 : vector<12x1xf32> to vector<12x128xf32>
    %162 = arith.subf %152, %161 : vector<12x128xf32>
    %163 = arith.mulf %162, %162 : vector<12x128xf32>
    %cst_70 = arith.constant dense<0.000000e+00> : vector<12xf32>
    %164 = vector.multi_reduction <add>, %163, %cst_70 [1] : vector<12x128xf32> to vector<12xf32>
    %165 = vector.shape_cast %164 : vector<12xf32> to vector<12x1xf32>
    %cst_71 = arith.constant 1.280000e+02 : f32
    %166 = vector.broadcast %cst_71 : f32 to vector<12x1xf32>
    %167 = arith.divf %165, %166 : vector<12x1xf32>
    %168 = vector.broadcast %160 : vector<12x1xf32> to vector<12x128xf32>
    %169 = arith.subf %152, %168 : vector<12x128xf32>
    %cst_72 = arith.constant 9.99999974E-6 : f32
    %170 = vector.broadcast %cst_72 : f32 to vector<12x1xf32>
    %171 = arith.addf %167, %170 : vector<12x1xf32>
    %172 = math.rsqrt %171 : vector<12x1xf32>
    %173 = vector.broadcast %172 : vector<12x1xf32> to vector<12x128xf32>
    %174 = arith.mulf %169, %173 : vector<12x128xf32>
    %175 = vector.broadcast %154 : vector<1x128xf32> to vector<12x128xf32>
    %176 = arith.mulf %174, %175 : vector<12x128xf32>
    %177 = vector.broadcast %156 : vector<1x128xf32> to vector<12x128xf32>
    %178 = arith.addf %176, %177 : vector<12x128xf32>
    %179 = arith.truncf %178 : vector<12x128xf32> to vector<12x128xbf16>
    %c1 = arith.constant 1 : index
    %c0_73 = arith.constant 0 : index
    %c0_74 = arith.constant 0 : index
    %180 = vector.load %arg7[%c1, %c0_73, %c0_74] : memref<2x128x384xbf16, #tpu.memory_space<vmem>>, vector<1x128x384xbf16>
    %181 = vector.shape_cast %180 : vector<1x128x384xbf16> to vector<128x384xbf16>
    %cst_75 = arith.constant dense<0.000000e+00> : vector<12x384xf32>
    %182 = tpu.matmul %179, %181, %cst_75 {dimension_numbers = #tpu.dot_dimension_numbers<[1], [0], [0], [1], [0, 0, 1, 1], [], []>} : vector<12x128xbf16>, vector<128x384xbf16>, vector<12x384xf32> -> vector<12x384xf32>
    %c1_76 = arith.constant 1 : index
    %c0_77 = arith.constant 0 : index
    %c0_78 = arith.constant 0 : index
    %183 = vector.load %arg8[%c1_76, %c0_77, %c0_78] : memref<2x1x384xf32, #tpu.memory_space<vmem>>, vector<1x1x384xf32>
    %184 = vector.shape_cast %183 : vector<1x1x384xf32> to vector<1x384xf32>
    %185 = vector.broadcast %184 : vector<1x384xf32> to vector<12x384xf32>
    %186 = arith.addf %182, %185 : vector<12x384xf32>
    %187 = vector.extract_strided_slice %186 {offsets = [0, 0], sizes = [12, 128], strides = [1, 1]} : vector<12x384xf32> to vector<12x128xf32>
    %188 = vector.extract_strided_slice %187 {offsets = [0, 0], sizes = [12, 32], strides = [1, 1]} : vector<12x128xf32> to vector<12x32xf32>
    %189 = vector.extract_strided_slice %187 {offsets = [0, 32], sizes = [12, 32], strides = [1, 1]} : vector<12x128xf32> to vector<12x32xf32>
    %190 = vector.extract_strided_slice %187 {offsets = [0, 64], sizes = [12, 32], strides = [1, 1]} : vector<12x128xf32> to vector<12x32xf32>
    %191 = vector.extract_strided_slice %187 {offsets = [0, 96], sizes = [12, 32], strides = [1, 1]} : vector<12x128xf32> to vector<12x32xf32>
    %192 = vector.shape_cast %188 : vector<12x32xf32> to vector<1x12x32xf32>
    %193 = vector.shape_cast %189 : vector<12x32xf32> to vector<1x12x32xf32>
    %194 = vector.shape_cast %190 : vector<12x32xf32> to vector<1x12x32xf32>
    %195 = vector.shape_cast %191 : vector<12x32xf32> to vector<1x12x32xf32>
    %196 = tpu.concatenate %192, %193, %194, %195 in 0 : vector<1x12x32xf32>, vector<1x12x32xf32>, vector<1x12x32xf32>, vector<1x12x32xf32> -> vector<4x12x32xf32>
    %197 = arith.truncf %196 : vector<4x12x32xf32> to vector<4x12x32xbf16>
    %198 = vector.extract_strided_slice %186 {offsets = [0, 128], sizes = [12, 128], strides = [1, 1]} : vector<12x384xf32> to vector<12x128xf32>
    %199 = vector.extract_strided_slice %198 {offsets = [0, 0], sizes = [12, 32], strides = [1, 1]} : vector<12x128xf32> to vector<12x32xf32>
    %200 = vector.extract_strided_slice %198 {offsets = [0, 32], sizes = [12, 32], strides = [1, 1]} : vector<12x128xf32> to vector<12x32xf32>
    %201 = vector.extract_strided_slice %198 {offsets = [0, 64], sizes = [12, 32], strides = [1, 1]} : vector<12x128xf32> to vector<12x32xf32>
    %202 = vector.extract_strided_slice %198 {offsets = [0, 96], sizes = [12, 32], strides = [1, 1]} : vector<12x128xf32> to vector<12x32xf32>
    %203 = vector.shape_cast %199 : vector<12x32xf32> to vector<1x12x32xf32>
    %204 = vector.shape_cast %200 : vector<12x32xf32> to vector<1x12x32xf32>
    %205 = vector.shape_cast %201 : vector<12x32xf32> to vector<1x12x32xf32>
    %206 = vector.shape_cast %202 : vector<12x32xf32> to vector<1x12x32xf32>
    %207 = tpu.concatenate %203, %204, %205, %206 in 0 : vector<1x12x32xf32>, vector<1x12x32xf32>, vector<1x12x32xf32>, vector<1x12x32xf32> -> vector<4x12x32xf32>
    %208 = arith.truncf %207 : vector<4x12x32xf32> to vector<4x12x32xbf16>
    %209 = vector.extract_strided_slice %186 {offsets = [0, 256], sizes = [12, 128], strides = [1, 1]} : vector<12x384xf32> to vector<12x128xf32>
    %210 = vector.extract_strided_slice %209 {offsets = [0, 0], sizes = [12, 32], strides = [1, 1]} : vector<12x128xf32> to vector<12x32xf32>
    %211 = vector.extract_strided_slice %209 {offsets = [0, 32], sizes = [12, 32], strides = [1, 1]} : vector<12x128xf32> to vector<12x32xf32>
    %212 = vector.extract_strided_slice %209 {offsets = [0, 64], sizes = [12, 32], strides = [1, 1]} : vector<12x128xf32> to vector<12x32xf32>
    %213 = vector.extract_strided_slice %209 {offsets = [0, 96], sizes = [12, 32], strides = [1, 1]} : vector<12x128xf32> to vector<12x32xf32>
    %214 = vector.shape_cast %210 : vector<12x32xf32> to vector<1x12x32xf32>
    %215 = vector.shape_cast %211 : vector<12x32xf32> to vector<1x12x32xf32>
    %216 = vector.shape_cast %212 : vector<12x32xf32> to vector<1x12x32xf32>
    %217 = vector.shape_cast %213 : vector<12x32xf32> to vector<1x12x32xf32>
    %218 = tpu.concatenate %214, %215, %216, %217 in 0 : vector<1x12x32xf32>, vector<1x12x32xf32>, vector<1x12x32xf32>, vector<1x12x32xf32> -> vector<4x12x32xf32>
    %219 = arith.truncf %218 : vector<4x12x32xf32> to vector<4x12x32xbf16>
    "tpu.trace_start"() <{level = 10 : i32, message = "hqd,hkd->hqk"}> : () -> ()
    %cst_79 = arith.constant dense<0.000000e+00> : vector<4x12x12xf32>
    %220 = tpu.matmul %197, %208, %cst_79 {dimension_numbers = #tpu.dot_dimension_numbers<[2], [2], [1], [1], [0, 0, 0, 1, 1, 1], [0], [0]>} : vector<4x12x32xbf16>, vector<4x12x32xbf16>, vector<4x12x12xf32> -> vector<4x12x12xf32>
    "tpu.trace_stop"() : () -> ()
    %cst_80 = arith.constant 0.176776692 : f32
    %221 = vector.broadcast %cst_80 : f32 to vector<4x12x12xf32>
    %222 = arith.mulf %220, %221 : vector<4x12x12xf32>
    %223 = vector.shape_cast %30 : vector<12x12xf32> to vector<1x12x12xf32>
    %224 = vector.broadcast %223 : vector<1x12x12xf32> to vector<4x12x12xf32>
    %225 = arith.addf %222, %224 : vector<4x12x12xf32>
    %cst_81 = arith.constant dense<0xFF800000> : vector<4x12xf32>
    %226 = vector.multi_reduction <maximumf>, %225, %cst_81 [2] : vector<4x12x12xf32> to vector<4x12xf32>
    %227 = vector.shape_cast %226 : vector<4x12xf32> to vector<4x12x1xf32>
    %228 = vector.broadcast %227 : vector<4x12x1xf32> to vector<4x12x12xf32>
    %229 = arith.subf %225, %228 : vector<4x12x12xf32>
    %230 = math.exp %229 : vector<4x12x12xf32>
    %cst_82 = arith.constant dense<0.000000e+00> : vector<4x12xf32>
    %231 = vector.multi_reduction <add>, %230, %cst_82 [2] : vector<4x12x12xf32> to vector<4x12xf32>
    %232 = vector.shape_cast %231 : vector<4x12xf32> to vector<4x12x1xf32>
    %233 = tpu.reciprocal %232 {approx = true} : vector<4x12x1xf32> -> vector<4x12x1xf32>
    %234 = vector.broadcast %233 : vector<4x12x1xf32> to vector<4x12x12xf32>
    %235 = arith.mulf %230, %234 : vector<4x12x12xf32>
    %236 = arith.truncf %235 : vector<4x12x12xf32> to vector<4x12x12xbf16>
    "tpu.trace_start"() <{level = 10 : i32, message = "hqk,hkd->hqd"}> : () -> ()
    %cst_83 = arith.constant dense<0.000000e+00> : vector<4x12x32xf32>
    %237 = tpu.matmul %236, %219, %cst_83 {dimension_numbers = #tpu.dot_dimension_numbers<[2], [1], [1], [2], [0, 0, 0, 1, 1, 2], [0], [0]>} : vector<4x12x12xbf16>, vector<4x12x32xbf16>, vector<4x12x32xf32> -> vector<4x12x32xf32>
    "tpu.trace_stop"() : () -> ()
    %238 = vector.extract_strided_slice %237 {offsets = [0, 0, 0], sizes = [1, 12, 32], strides = [1, 1, 1]} : vector<4x12x32xf32> to vector<1x12x32xf32>
    %239 = vector.shape_cast %238 : vector<1x12x32xf32> to vector<12x32xf32>
    %240 = vector.extract_strided_slice %237 {offsets = [1, 0, 0], sizes = [1, 12, 32], strides = [1, 1, 1]} : vector<4x12x32xf32> to vector<1x12x32xf32>
    %241 = vector.shape_cast %240 : vector<1x12x32xf32> to vector<12x32xf32>
    %242 = vector.extract_strided_slice %237 {offsets = [2, 0, 0], sizes = [1, 12, 32], strides = [1, 1, 1]} : vector<4x12x32xf32> to vector<1x12x32xf32>
    %243 = vector.shape_cast %242 : vector<1x12x32xf32> to vector<12x32xf32>
    %244 = vector.extract_strided_slice %237 {offsets = [3, 0, 0], sizes = [1, 12, 32], strides = [1, 1, 1]} : vector<4x12x32xf32> to vector<1x12x32xf32>
    %245 = vector.shape_cast %244 : vector<1x12x32xf32> to vector<12x32xf32>
    %246 = tpu.concatenate %239, %241, %243, %245 in 1 : vector<12x32xf32>, vector<12x32xf32>, vector<12x32xf32>, vector<12x32xf32> -> vector<12x128xf32>
    %247 = arith.truncf %246 : vector<12x128xf32> to vector<12x128xbf16>
    %c1_84 = arith.constant 1 : index
    %c0_85 = arith.constant 0 : index
    %c0_86 = arith.constant 0 : index
    %248 = vector.load %arg9[%c1_84, %c0_85, %c0_86] : memref<2x128x128xbf16, #tpu.memory_space<vmem>>, vector<1x128x128xbf16>
    %249 = vector.shape_cast %248 : vector<1x128x128xbf16> to vector<128x128xbf16>
    %cst_87 = arith.constant dense<0.000000e+00> : vector<12x128xf32>
    %250 = tpu.matmul %247, %249, %cst_87 {dimension_numbers = #tpu.dot_dimension_numbers<[1], [0], [0], [1], [0, 0, 1, 1], [], []>} : vector<12x128xbf16>, vector<128x128xbf16>, vector<12x128xf32> -> vector<12x128xf32>
    %c1_88 = arith.constant 1 : index
    %c0_89 = arith.constant 0 : index
    %c0_90 = arith.constant 0 : index
    %251 = vector.load %arg10[%c1_88, %c0_89, %c0_90] : memref<2x1x128xf32, #tpu.memory_space<vmem>>, vector<1x1x128xf32>
    %252 = vector.shape_cast %251 : vector<1x1x128xf32> to vector<1x128xf32>
    %253 = vector.broadcast %252 : vector<1x128xf32> to vector<12x128xf32>
    %254 = arith.addf %250, %253 : vector<12x128xf32>
    %255 = arith.addf %178, %254 : vector<12x128xf32>
    %c1_91 = arith.constant 1 : index
    %c0_92 = arith.constant 0 : index
    %c0_93 = arith.constant 0 : index
    %256 = vector.load %arg11[%c1_91, %c0_92, %c0_93] : memref<2x1x128xf32, #tpu.memory_space<vmem>>, vector<1x1x128xf32>
    %257 = vector.shape_cast %256 : vector<1x1x128xf32> to vector<1x128xf32>
    %c1_94 = arith.constant 1 : index
    %c0_95 = arith.constant 0 : index
    %c0_96 = arith.constant 0 : index
    %258 = vector.load %arg12[%c1_94, %c0_95, %c0_96] : memref<2x1x128xf32, #tpu.memory_space<vmem>>, vector<1x1x128xf32>
    %259 = vector.shape_cast %258 : vector<1x1x128xf32> to vector<1x128xf32>
    %cst_97 = arith.constant dense<0.000000e+00> : vector<12xf32>
    %260 = vector.multi_reduction <add>, %255, %cst_97 [1] : vector<12x128xf32> to vector<12xf32>
    %261 = vector.shape_cast %260 : vector<12xf32> to vector<12x1xf32>
    %cst_98 = arith.constant 1.280000e+02 : f32
    %262 = vector.broadcast %cst_98 : f32 to vector<12x1xf32>
    %263 = arith.divf %261, %262 : vector<12x1xf32>
    %264 = vector.broadcast %263 : vector<12x1xf32> to vector<12x128xf32>
    %265 = arith.subf %255, %264 : vector<12x128xf32>
    %266 = arith.mulf %265, %265 : vector<12x128xf32>
    %cst_99 = arith.constant dense<0.000000e+00> : vector<12xf32>
    %267 = vector.multi_reduction <add>, %266, %cst_99 [1] : vector<12x128xf32> to vector<12xf32>
    %268 = vector.shape_cast %267 : vector<12xf32> to vector<12x1xf32>
    %cst_100 = arith.constant 1.280000e+02 : f32
    %269 = vector.broadcast %cst_100 : f32 to vector<12x1xf32>
    %270 = arith.divf %268, %269 : vector<12x1xf32>
    %271 = vector.broadcast %263 : vector<12x1xf32> to vector<12x128xf32>
    %272 = arith.subf %255, %271 : vector<12x128xf32>
    %cst_101 = arith.constant 9.99999974E-6 : f32
    %273 = vector.broadcast %cst_101 : f32 to vector<12x1xf32>
    %274 = arith.addf %270, %273 : vector<12x1xf32>
    %275 = math.rsqrt %274 : vector<12x1xf32>
    %276 = vector.broadcast %275 : vector<12x1xf32> to vector<12x128xf32>
    %277 = arith.mulf %272, %276 : vector<12x128xf32>
    %278 = vector.broadcast %257 : vector<1x128xf32> to vector<12x128xf32>
    %279 = arith.mulf %277, %278 : vector<12x128xf32>
    %280 = vector.broadcast %259 : vector<1x128xf32> to vector<12x128xf32>
    %281 = arith.addf %279, %280 : vector<12x128xf32>
    %282 = arith.truncf %281 : vector<12x128xf32> to vector<12x128xbf16>
    %c1_102 = arith.constant 1 : index
    %c0_103 = arith.constant 0 : index
    %c0_104 = arith.constant 0 : index
    %283 = vector.load %arg13[%c1_102, %c0_103, %c0_104] : memref<2x128x64xbf16, #tpu.memory_space<vmem>>, vector<1x128x64xbf16>
    %284 = vector.shape_cast %283 : vector<1x128x64xbf16> to vector<128x64xbf16>
    %cst_105 = arith.constant dense<0.000000e+00> : vector<12x64xf32>
    %285 = tpu.matmul %282, %284, %cst_105 {dimension_numbers = #tpu.dot_dimension_numbers<[1], [0], [0], [1], [0, 0, 1, 1], [], []>} : vector<12x128xbf16>, vector<128x64xbf16>, vector<12x64xf32> -> vector<12x64xf32>
    %c1_106 = arith.constant 1 : index
    %c0_107 = arith.constant 0 : index
    %c0_108 = arith.constant 0 : index
    %286 = vector.load %arg14[%c1_106, %c0_107, %c0_108] : memref<2x1x64xf32, #tpu.memory_space<vmem>>, vector<1x1x64xf32>
    %287 = vector.shape_cast %286 : vector<1x1x64xf32> to vector<1x64xf32>
    %288 = vector.broadcast %287 : vector<1x64xf32> to vector<12x64xf32>
    %289 = arith.addf %285, %288 : vector<12x64xf32>
    %cst_109 = arith.constant 0.000000e+00 : f32
    %290 = vector.broadcast %cst_109 : f32 to vector<12x64xf32>
    %291 = arith.maximumf %289, %290 : vector<12x64xf32>
    %292 = arith.truncf %291 : vector<12x64xf32> to vector<12x64xbf16>
    %c1_110 = arith.constant 1 : index
    %c0_111 = arith.constant 0 : index
    %c0_112 = arith.constant 0 : index
    %293 = vector.load %arg15[%c1_110, %c0_111, %c0_112] : memref<2x64x128xbf16, #tpu.memory_space<vmem>>, vector<1x64x128xbf16>
    %294 = vector.shape_cast %293 : vector<1x64x128xbf16> to vector<64x128xbf16>
    %cst_113 = arith.constant dense<0.000000e+00> : vector<12x128xf32>
    %295 = tpu.matmul %292, %294, %cst_113 {dimension_numbers = #tpu.dot_dimension_numbers<[1], [0], [0], [1], [0, 0, 1, 1], [], []>} : vector<12x64xbf16>, vector<64x128xbf16>, vector<12x128xf32> -> vector<12x128xf32>
    %c1_114 = arith.constant 1 : index
    %c0_115 = arith.constant 0 : index
    %c0_116 = arith.constant 0 : index
    %296 = vector.load %arg16[%c1_114, %c0_115, %c0_116] : memref<2x1x128xf32, #tpu.memory_space<vmem>>, vector<1x1x128xf32>
    %297 = vector.shape_cast %296 : vector<1x1x128xf32> to vector<1x128xf32>
    %298 = vector.broadcast %297 : vector<1x128xf32> to vector<12x128xf32>
    %299 = arith.addf %295, %298 : vector<12x128xf32>
    %300 = arith.addf %281, %299 : vector<12x128xf32>
    %c1_117 = arith.constant 1 : index
    %c0_118 = arith.constant 0 : index
    %c0_119 = arith.constant 0 : index
    %301 = vector.load %arg17[%c1_117, %c0_118, %c0_119] : memref<2x1x128xf32, #tpu.memory_space<vmem>>, vector<1x1x128xf32>
    %302 = vector.shape_cast %301 : vector<1x1x128xf32> to vector<1x128xf32>
    %c1_120 = arith.constant 1 : index
    %c0_121 = arith.constant 0 : index
    %c0_122 = arith.constant 0 : index
    %303 = vector.load %arg18[%c1_120, %c0_121, %c0_122] : memref<2x1x128xf32, #tpu.memory_space<vmem>>, vector<1x1x128xf32>
    %304 = vector.shape_cast %303 : vector<1x1x128xf32> to vector<1x128xf32>
    %cst_123 = arith.constant dense<0.000000e+00> : vector<12xf32>
    %305 = vector.multi_reduction <add>, %300, %cst_123 [1] : vector<12x128xf32> to vector<12xf32>
    %306 = vector.shape_cast %305 : vector<12xf32> to vector<12x1xf32>
    %cst_124 = arith.constant 1.280000e+02 : f32
    %307 = vector.broadcast %cst_124 : f32 to vector<12x1xf32>
    %308 = arith.divf %306, %307 : vector<12x1xf32>
    %309 = vector.broadcast %308 : vector<12x1xf32> to vector<12x128xf32>
    %310 = arith.subf %300, %309 : vector<12x128xf32>
    %311 = arith.mulf %310, %310 : vector<12x128xf32>
    %cst_125 = arith.constant dense<0.000000e+00> : vector<12xf32>
    %312 = vector.multi_reduction <add>, %311, %cst_125 [1] : vector<12x128xf32> to vector<12xf32>
    %313 = vector.shape_cast %312 : vector<12xf32> to vector<12x1xf32>
    %cst_126 = arith.constant 1.280000e+02 : f32
    %314 = vector.broadcast %cst_126 : f32 to vector<12x1xf32>
    %315 = arith.divf %313, %314 : vector<12x1xf32>
    %316 = vector.broadcast %308 : vector<12x1xf32> to vector<12x128xf32>
    %317 = arith.subf %300, %316 : vector<12x128xf32>
    %cst_127 = arith.constant 9.99999974E-6 : f32
    %318 = vector.broadcast %cst_127 : f32 to vector<12x1xf32>
    %319 = arith.addf %315, %318 : vector<12x1xf32>
    %320 = math.rsqrt %319 : vector<12x1xf32>
    %321 = vector.broadcast %320 : vector<12x1xf32> to vector<12x128xf32>
    %322 = arith.mulf %317, %321 : vector<12x128xf32>
    %323 = vector.broadcast %302 : vector<1x128xf32> to vector<12x128xf32>
    %324 = arith.mulf %322, %323 : vector<12x128xf32>
    %325 = vector.broadcast %304 : vector<1x128xf32> to vector<12x128xf32>
    %326 = arith.addf %324, %325 : vector<12x128xf32>
    %327 = arith.truncf %326 : vector<12x128xf32> to vector<12x128xbf16>
    %c0_128 = arith.constant 0 : index
    %c0_129 = arith.constant 0 : index
    %328 = vector.load %arg19[%c0_128, %c0_129] : memref<128x128xbf16, #tpu.memory_space<vmem>>, vector<128x128xbf16>
    %cst_130 = arith.constant dense<0.000000e+00> : vector<12x128xf32>
    %329 = tpu.matmul %327, %328, %cst_130 {dimension_numbers = #tpu.dot_dimension_numbers<[1], [0], [0], [1], [0, 0, 1, 1], [], []>} : vector<12x128xbf16>, vector<128x128xbf16>, vector<12x128xf32> -> vector<12x128xf32>
    %c0_131 = arith.constant 0 : index
    %c0_132 = arith.constant 0 : index
    %330 = vector.load %arg20[%c0_131, %c0_132] : memref<1x128xf32, #tpu.memory_space<vmem>>, vector<1x128xf32>
    %331 = vector.broadcast %330 : vector<1x128xf32> to vector<12x128xf32>
    %332 = arith.addf %329, %331 : vector<12x128xf32>
    %c0_133 = arith.constant 0 : index
    %c0_134 = arith.constant 0 : index
    %c0_135 = arith.constant 0 : index
    %333 = vector.load %arg21[%c0_133, %c0_134, %c0_135] : memref<1x12x128xf32, #tpu.memory_space<vmem>>, vector<1x12x128xf32>
    %334 = vector.shape_cast %333 : vector<1x12x128xf32> to vector<12x128xf32>
    %335 = vector.shape_cast %332 : vector<12x128xf32> to vector<1x12x128xf32>
    tpu.vector_store %arg21[%c0_133, %c0_134, %c0_135], %335 {strides = array<i32>} : memref<1x12x128xf32, #tpu.memory_space<vmem>>, vector<1x12x128xf32>,
    return
  }
  func.func @transform_0(%arg0: i32) -> (i32, i32) {
    %c0_i32 = arith.constant 0 : i32
    %c0_i32_0 = arith.constant 0 : i32
    return %arg0, %c0_i32 : i32, i32
  }
  func.func @transform_1(%arg0: i32) -> (i32, i32) {
    %c0_i32 = arith.constant 0 : i32
    %c0_i32_0 = arith.constant 0 : i32
    %c0_i32_1 = arith.constant 0 : i32
    return %c0_i32, %c0_i32_0 : i32, i32
  }
  func.func @transform_2(%arg0: i32) -> (i32, i32, i32) {
    %c0_i32 = arith.constant 0 : i32
    %c0_i32_0 = arith.constant 0 : i32
    %c0_i32_1 = arith.constant 0 : i32
    return %arg0, %c0_i32, %c0_i32_0 : i32, i32, i32
  }
  func.func @transform_3(%arg0: i32) -> (i32, i32) {
    %c0_i32 = arith.constant 0 : i32
    %c0_i32_0 = arith.constant 0 : i32
    %c0_i32_1 = arith.constant 0 : i32
    return %c0_i32, %c0_i32_0 : i32, i32
  }
  func.func @transform_4(%arg0: i32) -> (i32, i32) {
    %c0_i32 = arith.constant 0 : i32
    %c0_i32_0 = arith.constant 0 : i32
    %c0_i32_1 = arith.constant 0 : i32
    return %c0_i32, %c0_i32_0 : i32, i32
  }
  func.func @transform_5(%arg0: i32) -> (i32, i32) {
    %c0_i32 = arith.constant 0 : i32
    %c0_i32_0 = arith.constant 0 : i32
    %c0_i32_1 = arith.constant 0 : i32
    return %c0_i32, %c0_i32_0 : i32, i32
  }
  func.func @transform_6(%arg0: i32) -> (i32, i32, i32) {
    %c0_i32 = arith.constant 0 : i32
    %c0_i32_0 = arith.constant 0 : i32
    %c0_i32_1 = arith.constant 0 : i32
    %c0_i32_2 = arith.constant 0 : i32
    return %c0_i32, %c0_i32_0, %c0_i32_1 : i32, i32, i32
  }
  func.func @transform_7(%arg0: i32) -> (i32, i32, i32) {
    %c0_i32 = arith.constant 0 : i32
    %c0_i32_0 = arith.constant 0 : i32
    %c0_i32_1 = arith.constant 0 : i32
    %c0_i32_2 = arith.constant 0 : i32
    return %c0_i32, %c0_i32_0, %c0_i32_1 : i32, i32, i32
  }
  func.func @transform_8(%arg0: i32) -> (i32, i32, i32) {
    %c0_i32 = arith.constant 0 : i32
    %c0_i32_0 = arith.constant 0 : i32
    %c0_i32_1 = arith.constant 0 : i32
    %c0_i32_2 = arith.constant 0 : i32
    return %c0_i32, %c0_i32_0, %c0_i32_1 : i32, i32, i32
  }
  func.func @transform_9(%arg0: i32) -> (i32, i32, i32) {
    %c0_i32 = arith.constant 0 : i32
    %c0_i32_0 = arith.constant 0 : i32
    %c0_i32_1 = arith.constant 0 : i32
    %c0_i32_2 = arith.constant 0 : i32
    return %c0_i32, %c0_i32_0, %c0_i32_1 : i32, i32, i32
  }
  func.func @transform_10(%arg0: i32) -> (i32, i32, i32) {
    %c0_i32 = arith.constant 0 : i32
    %c0_i32_0 = arith.constant 0 : i32
    %c0_i32_1 = arith.constant 0 : i32
    %c0_i32_2 = arith.constant 0 : i32
    return %c0_i32, %c0_i32_0, %c0_i32_1 : i32, i32, i32
  }
  func.func @transform_11(%arg0: i32) -> (i32, i32, i32) {
    %c0_i32 = arith.constant 0 : i32
    %c0_i32_0 = arith.constant 0 : i32
    %c0_i32_1 = arith.constant 0 : i32
    %c0_i32_2 = arith.constant 0 : i32
    return %c0_i32, %c0_i32_0, %c0_i32_1 : i32, i32, i32
  }
  func.func @transform_12(%arg0: i32) -> (i32, i32, i32) {
    %c0_i32 = arith.constant 0 : i32
    %c0_i32_0 = arith.constant 0 : i32
    %c0_i32_1 = arith.constant 0 : i32
    %c0_i32_2 = arith.constant 0 : i32
    return %c0_i32, %c0_i32_0, %c0_i32_1 : i32, i32, i32
  }
  func.func @transform_13(%arg0: i32) -> (i32, i32, i32) {
    %c0_i32 = arith.constant 0 : i32
    %c0_i32_0 = arith.constant 0 : i32
    %c0_i32_1 = arith.constant 0 : i32
    %c0_i32_2 = arith.constant 0 : i32
    return %c0_i32, %c0_i32_0, %c0_i32_1 : i32, i32, i32
  }
  func.func @transform_14(%arg0: i32) -> (i32, i32, i32) {
    %c0_i32 = arith.constant 0 : i32
    %c0_i32_0 = arith.constant 0 : i32
    %c0_i32_1 = arith.constant 0 : i32
    %c0_i32_2 = arith.constant 0 : i32
    return %c0_i32, %c0_i32_0, %c0_i32_1 : i32, i32, i32
  }
  func.func @transform_15(%arg0: i32) -> (i32, i32, i32) {
    %c0_i32 = arith.constant 0 : i32
    %c0_i32_0 = arith.constant 0 : i32
    %c0_i32_1 = arith.constant 0 : i32
    %c0_i32_2 = arith.constant 0 : i32
    return %c0_i32, %c0_i32_0, %c0_i32_1 : i32, i32, i32
  }
  func.func @transform_16(%arg0: i32) -> (i32, i32, i32) {
    %c0_i32 = arith.constant 0 : i32
    %c0_i32_0 = arith.constant 0 : i32
    %c0_i32_1 = arith.constant 0 : i32
    %c0_i32_2 = arith.constant 0 : i32
    return %c0_i32, %c0_i32_0, %c0_i32_1 : i32, i32, i32
  }
  func.func @transform_17(%arg0: i32) -> (i32, i32, i32) {
    %c0_i32 = arith.constant 0 : i32
    %c0_i32_0 = arith.constant 0 : i32
    %c0_i32_1 = arith.constant 0 : i32
    %c0_i32_2 = arith.constant 0 : i32
    return %c0_i32, %c0_i32_0, %c0_i32_1 : i32, i32, i32
  }
  func.func @transform_18(%arg0: i32) -> (i32, i32) {
    %c0_i32 = arith.constant 0 : i32
    %c0_i32_0 = arith.constant 0 : i32
    %c0_i32_1 = arith.constant 0 : i32
    return %c0_i32, %c0_i32_0 : i32, i32
  }
  func.func @transform_19(%arg0: i32) -> (i32, i32) {
    %c0_i32 = arith.constant 0 : i32
    %c0_i32_0 = arith.constant 0 : i32
    %c0_i32_1 = arith.constant 0 : i32
    return %c0_i32, %c0_i32_0 : i32, i32
  }
  func.func @transform_20(%arg0: i32) -> (i32, i32, i32) {
    %c0_i32 = arith.constant 0 : i32
    %c0_i32_0 = arith.constant 0 : i32
    %c0_i32_1 = arith.constant 0 : i32
    return %arg0, %c0_i32, %c0_i32_0 : i32, i32, i32
  }
}

</mosaic_0001>

<bundles_post_ra>
// kernel: tile.9
= control target key start
LH: loop header
LB: loop body
LE: loop exit
PB: predicated region body
PF: predicated region fallthrough
CT: control target
= control target key end

     0   :  { %s32_s0 = inlined_call_operand.vmem [shape: f32[2,6,128], index: 0, kind: input, shape index: {}]   ;;  %s33_s1 = inlined_call_operand.vmem [shape: f32[12,128], index: 1, kind: output, shape index: {}]  }
   0x1   :  { %v2_v0 = vld [vmem:[%s32_s0] sm:$0x3f]   ;;  %v8_v1 = vld [vmem:[%s32_s0 + $0x8] sm:$0x3f]  }
   0x2   :  { %3 = vst [vmem:[%s33_s1] sm:$0x3f] %v2_v0  }
   0x3   :  { %9 = vst [vmem:[%s33_s1 + $0x6] sm:$0x3f] %v8_v1  }

// kernel: forward.1
= control target key start
LH: loop header
LB: loop body
LE: loop exit
PB: predicated region body
PF: predicated region fallthrough
CT: control target
= control target key end

     0   :  { %vm82_vm0 = vcmask 1043456   ;;  %vm75_vm1 = vcmask 293888   ;;  %v3111_v14 = vmov 128.0   ;;  %s3112_s25 = smov 32   ;;  %vm477_vm9 = vcmask 261120   ;;  %s3114_s26 = smov 64   ;;  %s3983_s0 = inlined_call_operand.vmem [shape: f32[36,128], index: 0, kind: input, shape index: {}]   ;;  %s3984_s1 = inlined_call_operand.vmem [shape: f32[12,36], index: 1, kind: input, shape index: {}]   ;;  %s3985_s3 = inlined_call_operand.vmem [shape: f32[12,128], index: 3, kind: input, shape index: {}]   ;;  %s3986_s4 = inlined_call_operand.vmem [shape: f32[1,128], index: 4, kind: input, shape index: {}]   ;;  %s3987_s5 = inlined_call_operand.vmem [shape: f32[1,128], index: 5, kind: input, shape index: {}]   ;;  %s3988_s6 = inlined_call_operand.vmem [shape: bf16[2,128,384], index: 6, kind: input, shape index: {}]   ;;  %s3989_s7 = inlined_call_operand.vmem [shape: f32[2,1,384], index: 7, kind: input, shape index: {}]   ;;  %s3990_s2 = inlined_call_operand.vmem [shape: f32[1,12,12], index: 2, kind: input, shape index: {}]   ;;  %s3991_s9 = inlined_call_operand.vmem [shape: f32[2,1,128], index: 9, kind: input, shape index: {}]   ;;  %s3992_s8 = inlined_call_operand.vmem [shape: bf16[2,128,128], index: 8, kind: input, shape index: {}]   ;;  %s3993_s10 = inlined_call_operand.vmem [shape: f32[2,1,128], index: 10, kind: input, shape index: {}]   ;;  %s3994_s11 = inlined_call_operand.vmem [shape: f32[2,1,128], index: 11, kind: input, shape index: {}]   ;;  %s3995_s13 = inlined_call_operand.vmem [shape: f32[2,1,64], index: 13, kind: input, shape index: {}]   ;;  %s3996_s12 = inlined_call_operand.vmem [shape: bf16[2,128,64], index: 12, kind: input, shape index: {}]   ;;  %s3997_s15 = inlined_call_operand.vmem [shape: f32[2,1,128], index: 15, kind: input, shape index: {}]   ;;  %s3998_s14 = inlined_call_operand.vmem [shape: bf16[2,64,128], index: 14, kind: input, shape index: {}]   ;;  %s3999_s16 = inlined_call_operand.vmem [shape: f32[2,1,128], index: 16, kind: input, shape index: {}]   ;;  %s4000_s17 = inlined_call_operand.vmem [shape: f32[2,1,128], index: 17, kind: input, shape index: {}]   ;;  %s4001_s19 = inlined_call_operand.vmem [shape: f32[1,128], index: 19, kind: input, shape index: {}]   ;;  %s4002_s18 = inlined_call_operand.vmem [shape: bf16[128,128], index: 18, kind: input, shape index: {}]   ;;  %s4003_s20 = inlined_call_operand.vmem [shape: f32[1,12,128], index: 20, kind: output, shape index: {}]  }
   0x1   :  { %4007 = sst [smem:[#allocation2_spill]] %s3983_s0  ;;  %3023 = vrcp.f32 %v3111_v14  ;;  %v2390_v30 = vld [vmem:[%s3988_s6 + $0xa8] sm:$0xf]  ;;  %v2808_v31 = vld [vmem:[%s3988_s6 + $0xb0] sm:$0xf0]  ;;  %vm715_vm10 = vcmask 1045504  }
   0x2   :  { %4008 = sst [smem:[#allocation3_spill]] %s3984_s1  ;;  %v2807_v32 = vld [vmem:[%s3988_s6 + $0xac] sm:$0xf]  ;;  %v2391_v33 = vor.u32 %v2808_v31, %v2390_v30  ;;  %v2392_v34 = vld [vmem:[%s3988_s6 + $0xb4] sm:$0xf0]  ;;  %vm604_vm11 = vcmask 97280  }
   0x3   :  { %4009 = sst [smem:[#allocation4_spill]] %s3985_s3  ;;  %v2398_v35 = vld [vmem:[%s3988_s6 + $0xb0] sm:$0xf]  ;;  %v2809_v36 = vld [vmem:[%s3988_s6 + $0xb8] sm:$0xf0]  ;;  %v2395_v37 = vor.u32 %v2807_v32, %v2392_v34  ;;  %vm608_vm12 = vcmask 93184  }
   0x4   :  { %4010 = sst [smem:[#allocation5_spill]] %s3986_s4  ;;  %v2399_v38 = vor.u32 %v2809_v36, %v2398_v35  ;;  %341 = vmatpush.bf16.msra.mxu1 %v2391_v33  ;;  %v2378_v39 = vld [vmem:[%s3988_s6 + $0x90] sm:$0xf]  ;;  %v2805_v40 = vld [vmem:[%s3988_s6 + $0x98] sm:$0xf0]  ;;  %s3113_s4 = smov 96  }
   0x5   :  { %4011 = sst [smem:[#allocation6_spill]] %s3987_s5  ;;  %355 = vmatpush.bf16.msra.mxu2 %v2395_v37  ;;  %v2804_v41 = vld [vmem:[%s3988_s6 + $0x94] sm:$0xf]  ;;  %v2379_v42 = vor.u32 %v2805_v40, %v2378_v39  ;;  %v2380_v43 = vld [vmem:[%s3988_s6 + $0x9c] sm:$0xf0]  ;;  %vm849_vm13 = vcmask 523264  }
   0x6   :  { %s4012_s23 = sld [smem:[#allocation2_spill]]  ;;  %369 = vmatpush.bf16.msra.mxu3 %v2399_v38  ;;  %v2386_v44 = vld [vmem:[%s3988_s6 + $0x98] sm:$0xf]  ;;  %v2806_v45 = vld [vmem:[%s3988_s6 + $0xa0] sm:$0xf0]  ;;  %v2383_v46 = vor.u32 %v2804_v41, %v2380_v43  ;;  %vm852_vm14 = vcmask 785408  }
   0x7   :  { %s4013_s0 = sld [smem:[#allocation3_spill]]  ;;  %v3024_v15 = vpop.eup %3023  ;;  %v2387_v47 = vor.u32 %v2806_v45, %v2386_v44  ;;  %v2366_v48 = vld [vmem:[%s3988_s6 + $0x78] sm:$0xf]  ;;  %v2802_v49 = vld [vmem:[%s3988_s6 + $0x80] sm:$0xf0] }
   0x8   :  { %s4014_s3 = sld [smem:[#allocation4_spill]]  ;;  %v117_v16 = vmul.f32 128.0, %v3024_v15  ;;  %vm121_vm2 = vweird.f32 %v3024_v15  ;;  %342 = vmatpush.bf16.msra.mxu1 %v2379_v42  ;;  %v2801_v50 = vld [vmem:[%s3988_s6 + $0x7c] sm:$0xf]  ;;  %v2367_v51 = vor.u32 %v2802_v49, %v2366_v48  ;;  %v2368_v52 = vld [vmem:[%s3988_s6 + $0x84] sm:$0xf0] }
   0x9   :  { %356 = vmatpush.bf16.msra.mxu2 %v2383_v46  ;;  %v2374_v53 = vld [vmem:[%s3988_s6 + $0x80] sm:$0xf]  ;;  %v2803_v54 = vld [vmem:[%s3988_s6 + $0x88] sm:$0xf0]  ;;  %v2371_v55 = vor.u32 %v2801_v50, %v2368_v52  ;;  %v2798_v59 = vld [vmem:[%s3988_s6 + $0x64] sm:$0xf] }
   0xa   :  { %v118_v17 = vsub.f32 1.0, %v117_v16  ;;  %370 = vmatpush.bf16.msra.mxu3 %v2387_v47  ;;  %v2375_v56 = vor.u32 %v2803_v54, %v2374_v53  ;;  %v2354_v57 = vld [vmem:[%s3988_s6 + $0x60] sm:$0xf]  ;;  %v2799_v58 = vld [vmem:[%s3988_s6 + $0x68] sm:$0xf0]  ;;  %s4015_s21 = sld [smem:[#allocation5_spill]] }
   0xb   :  { %v2355_v60 = vor.u32 %v2799_v58, %v2354_v57  ;;  %v2356_v61 = vld [vmem:[%s3988_s6 + $0x6c] sm:$0xf0]  ;;  %v2362_v62 = vld [vmem:[%s3988_s6 + $0x68] sm:$0xf]  ;;  %v2800_v63 = vld [vmem:[%s3988_s6 + $0x70] sm:$0xf0] }
   0xc   :  { %v70_v0 = vld [vmem:[%s4012_s23 + $0x20] sm:$0xf]  ;;  %v69_v1 = vld [vmem:[%s4012_s23 + $0x18] sm:$0xff]  ;;  %v68_v2 = vld [vmem:[%s4012_s23 + $0x10] sm:$0xff]  ;;  %v119_v18 = vmul.f32 %v3024_v15, %v118_v17  ;;  %343 = vmatpush.bf16.msra.mxu1 %v2367_v51  ;;  %s4016_s24 = sld [smem:[#allocation6_spill]] }
   0xd   :  { %2301 = vmatpush.msk.msra.mxu0 %vm82_vm0, %v70_v0  ;;  %v67_v3 = vld [vmem:[%s4012_s23 + $0x8] sm:$0xff]  ;;  %v66_v4 = vld [vmem:[%s4012_s23] sm:$0xff]  ;;  %357 = vmatpush.bf16.msra.mxu2 %v2371_v55  ;;  %v2359_v0 = vor.u32 %v2798_v59, %v2356_v61  ;;  %v2338_v16 = vld [vmem:[%s3988_s6 + $0x38] sm:$0xf] }
   0xe   :  { %v71_v5 = vld [vmem:[%s4013_s0] sm:$0xff]  ;;  %v72_v6 = vld [vmem:[%s4013_s0 + $0x8] sm:$0xf]  ;;  %v120_v20 = vadd.f32 %v3024_v15, %v119_v18  ;;  %371 = vmatpush.bf16.msra.mxu3 %v2375_v56  ;;  %v2787_v33 = vld [vmem:[%s3988_s6 + $0x8] sm:$0xf0] }
   0xf   :  { %98 = vmatpush.msra.mxu0 %v69_v1  ;;  %v74_v8 = vld [vmem:[%s4014_s3 + $0x8] sm:$0xf]  ;;  %v73_v12 = vld [vmem:[%s4014_s3] sm:$0xff]  ;;  %v2363_v1 = vor.u32 %v2800_v63, %v2362_v62  ;;  %v2308_v37 = vld [vmem:[%s3988_s6 + $0xc] sm:$0xf0] }
  0x10   :  { %v3249_v21 = vsel %vm121_vm2, %v3024_v15, %v120_v20  ;;  %344 = vmatpush.bf16.msra.mxu1 %v2355_v60  ;;  %v2332_v15 = vld [vmem:[%s3988_s6 + $0x3c] sm:$0xf0]  ;;  %v2794_v17 = vld [vmem:[%s3988_s6 + $0x40] sm:$0xf0]  ;;  %v2318_v20 = vld [vmem:[%s3988_s6 + $0x18] sm:$0xf] }
  0x11   :  { %99 = vmatpush.msra.mxu0 %v68_v2  ;;  %358 = vmatpush.bf16.msra.mxu2 %v2359_v0  ;;  %v2342_v2 = vld [vmem:[%s3988_s6 + $0x48] sm:$0xf]  ;;  %v2306_v32 = vld [vmem:[%s3988_s6] sm:$0xf]  ;;  %v2786_v34 = vld [vmem:[%s3988_s6 + $0x4] sm:$0xf] }
  0x12   :  { %372 = vmatpush.bf16.msra.mxu3 %v2363_v1  ;;  %v2307_v36 = vor.u32 %v2787_v33, %v2306_v32  ;;  %v2314_v38 = vld [vmem:[%s3988_s6 + $0x8] sm:$0xf]  ;;  %v2788_v39 = vld [vmem:[%s3988_s6 + $0x10] sm:$0xf0]  ;;  %v2311_v41 = vor.u32 %v2786_v34, %v2308_v37  ;;  %v3006_v60 = vld [vmem:[%s4015_s21] ss:$0 sm:$0xff] }
  0x13   :  { %100 = vmatpush.msra.mxu0 %v67_v3  ;;  %v2796_v3 = vld [vmem:[%s3988_s6 + $0x50] sm:$0xf0]  ;;  %v2315_v42 = vor.u32 %v2788_v39, %v2314_v38  ;;  %v3007_v1 = vld [vmem:[%s4016_s24] ss:$0 sm:$0xff] }
  0x15   :  { %101 = vmatpush.msra.mxu0 %v66_v4  ;;  %v2795_v4 = vld [vmem:[%s3988_s6 + $0x4c] sm:$0xf] }
  0x16   :  { %2302 = vmatmul.msk.f32.vlgmr.msra.gmra.mxu0 %vm75_vm1, %v71_v5  ;;  %v2343_v5 = vor.u32 %v2796_v3, %v2342_v2 }
  0x18   :  { %345 = vmatpush.bf16.msra.mxu1 %v2343_v5 }
  0x1e   :  { %2303 = vmatmul.msk.f32.gmra.mxu0 %vm75_vm1, %v72_v6  ;;  %v2344_v6 = vld [vmem:[%s3988_s6 + $0x54] sm:$0xf0] }
  0x93   :  { %v103_v7 = vpop.f32.mrf.mxu0 }
  0x94   :  { %v104_v13 = vadd.f32 %v103_v7, %v73_v12  ;;  %v2350_v7 = vld [vmem:[%s3988_s6 + $0x50] sm:$0xf]  ;;  %v2793_v12 = vld [vmem:[%s3988_s6 + $0x38] sm:$0xf0] }
  0x9b   :  { %v106_v9 = vpop.f32.mrf.mxu0 }
  0x9c   :  { %v107_v10 = vadd.f32 %v106_v9, %v74_v8  ;;  %v2797_v8 = vld [vmem:[%s3988_s6 + $0x58] sm:$0xf0]  ;;  %v2347_v9 = vor.u32 %v2795_v4, %v2344_v6 }
  0x9e   :  { %v113_v11 = vsel %vm82_vm0, %v107_v10, 0.0  ;;  %359 = vmatpush.bf16.msra.mxu2 %v2347_v9 }
  0x9f   :  { %114 = vadd.xlane.f32.xlu0 %v113_v11  ;;  %v2330_v11 = vld [vmem:[%s3988_s6 + $0x30] sm:$0xf] }
  0xa0   :  { %v2331_v14 = vor.u32 %v2793_v12, %v2330_v11 }
  0xa2   :  { %346 = vmatpush.bf16.msra.mxu1 %v2331_v14 }
  0xa7   :  { %111 = vadd.xlane.f32.xlu0 %v104_v13 }
 0x112   :  { %v115_v19 = vpop.xlane.xlu0 %114 }
 0x113   :  { %v124_v24 = vmul.f32 %v3249_v21, %v115_v19  ;;  %v2339_v19 = vor.u32 %v2794_v17, %v2338_v16 }
 0x115   :  { %v3257_v27 = vsub.f32 %v107_v10, %v124_v24  ;;  %v2351_v10 = vor.u32 %v2797_v8, %v2350_v7 }
 0x117   :  { %v128_v28 = vmul.f32 %v3257_v27, %v3257_v27  ;;  %373 = vmatpush.bf16.msra.mxu3 %v2351_v10 }
 0x119   :  { %v131_v29 = vsel %vm82_vm0, %v128_v28, 0.0  ;;  %v2326_v28 = vld [vmem:[%s3988_s6 + $0x20] sm:$0xf] }
 0x11a   :  { %v112_v22 = vpop.xlane.xlu0 %111 }
 0x11b   :  { %v123_v23 = vmul.f32 %v3249_v21, %v112_v22  ;;  %374 = vmatpush.bf16.msra.mxu3 %v2339_v19  ;;  %v2790_v22 = vld [vmem:[%s3988_s6 + $0x20] sm:$0xf0] }
 0x11c   :  { %v2319_v24 = vor.u32 %v2790_v22, %v2318_v20 }
 0x11d   :  { %v3253_v25 = vsub.f32 %v104_v13, %v123_v23  ;;  %v2792_v13 = vld [vmem:[%s3988_s6 + $0x34] sm:$0xf]  ;;  %v2789_v23 = vld [vmem:[%s3988_s6 + $0x1c] sm:$0xf] }
 0x11e   :  { %v2335_v18 = vor.u32 %v2792_v13, %v2332_v15  ;;  %347 = vmatpush.bf16.msra.mxu1 %v2319_v24 }
 0x11f   :  { %v127_v26 = vmul.f32 %v3253_v25, %v3253_v25 }
 0x120   :  { %360 = vmatpush.bf16.msra.mxu2 %v2335_v18 }
 0x121   :  { %129 = vadd.xlane.f32.xlu1 %v127_v26  ;;  %v2320_v26 = vld [vmem:[%s3988_s6 + $0x24] sm:$0xf0] }
 0x122   :  { %v2323_v30 = vor.u32 %v2789_v23, %v2320_v26  ;;  %348 = vmatpush.bf16.msra.mxu1 %v2307_v36 }
 0x124   :  { %361 = vmatpush.bf16.msra.mxu2 %v2323_v30 }
 0x128   :  { %362 = vmatpush.bf16.msra.mxu2 %v2311_v41 }
 0x129   :  { %132 = vadd.xlane.f32.xlu1 %v131_v29  ;;  %v2791_v29 = vld [vmem:[%s3988_s6 + $0x28] sm:$0xf0] }
 0x12a   :  { %v2327_v31 = vor.u32 %v2791_v29, %v2326_v28 }
 0x12c   :  { %375 = vmatpush.bf16.msra.mxu3 %v2327_v31 }
 0x130   :  { %376 = vmatpush.bf16.msra.mxu3 %v2315_v42 }
 0x194   :  { %v130_v35 = vpop.xlane.xlu1 %129 }
 0x195   :  { %v134_v40 = vmul.f32 %v130_v35, %v3249_v21 }
 0x197   :  { %v136_v43 = vadd.f32 1e-05, %v134_v40 }
 0x199   :  { %3025 = vrsqrt.f32 %v136_v43  ;;  %vm144_vm4 = vweird.f32 %v136_v43 }
 0x19c   :  { %v133_v44 = vpop.xlane.xlu1 %132 }
 0x19d   :  { %v135_v45 = vmul.f32 %v133_v44, %v3249_v21 }
 0x19f   :  { %v3026_v46 = vpop.eup %3025  ;;  %v137_v47 = vadd.f32 1e-05, %v135_v45 }
 0x1a0   :  { %v139_v48 = vmul.f32 %v3026_v46, %v136_v43  ;;  %vm145_vm3 = vweird.f32 %v3026_v46 }
 0x1a1   :  { %3027 = vrsqrt.f32 %v137_v47  ;;  %vm146_vm5 = vmor %vm144_vm4, %vm145_vm3  ;;  %vm154_vm7 = vweird.f32 %v137_v47 }
 0x1a2   :  { %v140_v49 = vmul.f32 %v3026_v46, %v139_v48 }
 0x1a4   :  { %v141_v50 = vmul.f32 0.5, %v140_v49 }
 0x1a6   :  { %v142_v51 = vsub.f32 1.5, %v141_v50 }
 0x1a7   :  { %v3028_v52 = vpop.eup %3027 }
 0x1a8   :  { %v143_v53 = vmul.f32 %v3026_v46, %v142_v51  ;;  %v149_v54 = vmul.f32 %v3028_v52, %v137_v47  ;;  %vm155_vm6 = vweird.f32 %v3028_v52 }
 0x1a9   :  { %vm156_vm8 = vmor %vm154_vm7, %vm155_vm6 }
 0x1aa   :  { %v150_v55 = vmul.f32 %v3028_v52, %v149_v54  ;;  %v147_v56 = vsel %vm146_vm5, %v3026_v46, %v143_v53 }
 0x1ab   :  { %v158_v59 = vmul.f32 %v147_v56, %v3253_v25 }
 0x1ac   :  { %v151_v57 = vmul.f32 0.5, %v150_v55 }
 0x1ad   :  { %v163_v0 = vmul.f32 %v3006_v60, %v158_v59 }
 0x1ae   :  { %v152_v58 = vsub.f32 1.5, %v151_v57 }
 0x1af   :  { %v3416_v3 = vadd.f32 %v3007_v1, %v163_v0 }
 0x1b0   :  { %v153_v61 = vmul.f32 %v3028_v52, %v152_v58 }
 0x1b2   :  { %v157_v62 = vsel %vm156_vm8, %v3028_v52, %v153_v61 }
 0x1b3   :  { %v159_v63 = vmul.f32 %v157_v62, %v3257_v27  ;;  %v205_v27 = vld [vmem:[%s3989_s7] sm:$0x7] }
 0x1b4   :  { %v207_v6 = vperm.slane %v205_v27, 0  ;;  %v208_v8 = vperm.slane %v205_v27, 1  ;;  %v209_v10 = vperm.slane %v205_v27, 2 }
 0x1b5   :  { %v164_v2 = vmul.f32 %v3006_v60, %v159_v63 }
 0x1b7   :  { %v3418_v4 = vadd.f32 %v3007_v1, %v164_v2 }
 0x1b9   :  { %v172_v25 = vpack.c.bf16 %v3418_v4, %v3416_v3 }
 0x1bb   :  { %349 = vmatmul.bf16.vlgmr.msra.gmra.mxu1 %v172_v25  ;;  %363 = vmatmul.bf16.vlgmr.msra.gmra.mxu2 %v172_v25 }
 0x1bc   :  { %377 = vmatmul.bf16.vlgmr.msra.gmra.mxu3 %v172_v25 }
 0x238   :  { %v350_v5 = vpop.f32.mrf.mxu1 }
 0x239   :  { %v351_v12 = vadd.f32 %v350_v5, %v207_v6 }
 0x23b   :  { %v403_v37 = vpack.c.bf16 %v351_v12, %v351_v12 }
 0x23d   :  { %v469_v41 = vunpack.c.l.b16 %v403_v37 }
 0x23e   :  { %v364_v7 = vpop.f32.mrf.mxu2 }
 0x23f   :  { %v378_v9 = vpop.f32.mrf.mxu3  ;;  %v365_v14 = vadd.f32 %v364_v7, %v208_v8 }
 0x240   :  { %v352_v11 = vpop.f32.mrf.mxu1  ;;  %v379_v16 = vadd.f32 %v378_v9, %v209_v10 }
 0x241   :  { %v353_v13 = vadd.f32 %v352_v11, %v207_v6  ;;  %v431_v20 = vpack.c.bf16 %v365_v14, %v365_v14 }
 0x242   :  { %v459_v23 = vpack.c.bf16 %v379_v16, %v379_v16 }
 0x243   :  { %v2901_v15 = vpack.i.bf16 %v353_v13, %v351_v12  ;;  %v474_v30 = vunpack.c.l.b16 %v431_v20  ;;  %v404_v34 = vpack.c.bf16 %v353_v13, %v353_v13 }
 0x244   :  { %v709_v32 = vunpack.c.l.b16 %v459_v23 }
 0x245   :  { %2902 = vrot.lane.b32.xlu1 %v2901_v15, %s3112_s25  ;;  %2897 = vrot.lane.b32.xlu0 %v2901_v15, %s3113_s4  ;;  %v470_v40 = vunpack.c.l.b16 %v404_v34 }
 0x246   :  { %v366_v17 = vpop.f32.mrf.mxu2 }
 0x247   :  { %v367_v18 = vadd.f32 %v366_v17, %v208_v8  ;;  %v380_v19 = vpop.f32.mrf.mxu3  ;;  %v471_v42 = vpack.c.b16 %v470_v40, %v469_v41  ;;  %v171_v40 = vld [vmem:[%s3990_s2 + $0x8] sm:$0xf] }
 0x248   :  { %v381_v22 = vadd.f32 %v380_v19, %v209_v10 }
 0x249   :  { %v2886_v24 = vpack.i.bf16 %v367_v18, %v365_v14  ;;  %v432_v26 = vpack.c.bf16 %v367_v18, %v367_v18 }
 0x24a   :  { %v460_v28 = vpack.c.bf16 %v381_v22, %v381_v22  ;;  %v3427_v29 = vpack.i.bf16 %v381_v22, %v379_v16 }
 0x24b   :  { %2887 = vrot.lane.b32.xlu2 %v2886_v24, %s3113_s4  ;;  %v475_v31 = vunpack.c.l.b16 %v432_v26 }
 0x24c   :  { %v710_v33 = vunpack.c.l.b16 %v460_v28 }
 0x24d   :  { %v476_v35 = vpack.c.b16 %v475_v31, %v474_v30 }
 0x24e   :  { %v711_v36 = vpack.c.b16 %v710_v33, %v709_v32 }
 0x24f   :  { %v482_v38 = vsel %vm477_vm9, %v476_v35, 0  ;;  %v170_v35 = vld [vmem:[%s3990_s2] sm:$0xff] }
 0x250   :  { %491 = vmatpush.bf16.xpose.msrb.mxu0 %v482_v38  ;;  %v717_v39 = vsel %vm715_vm10, %v711_v36, 0 }
 0x251   :  { %726 = vmatpush.bf16.msrb.mxu3 %v717_v39 }
 0x253   :  { %2892 = vrot.lane.b32.xlu2 %v2886_v24, %s3112_s25 }
 0x257   :  { %2400 = vmatmul.msk.bf16.vlgmr.msrb.gmra.mxu0 %vm477_vm9, %v471_v42 }
 0x25b   :  { %2907 = vrot.lane.b32.xlu2 %v2886_v24, %s3114_s26 }
 0x263   :  { %2912 = vrot.lane.b32.xlu2 %v2901_v15, %s3114_s26 }
 0x2a5   :  { %v2888_v43 = vpop.permute.xlu2 %2887 }
 0x2a6   :  { %v2890_v44 = vunpack.i.h.bf16 %v2888_v43  ;;  %v2889_v45 = vunpack.i.l.bf16 %v2888_v43 }
 0x2a8   :  { %v434_v46 = vpack.c.bf16 %v2890_v44, %v2890_v44  ;;  %v433_v47 = vpack.c.bf16 %v2889_v45, %v2889_v45 }
 0x2aa   :  { %v506_v48 = vunpack.c.l.b16 %v434_v46  ;;  %v505_v49 = vunpack.c.l.b16 %v433_v47 }
 0x2ac   :  { %v507_v50 = vpack.c.b16 %v506_v48, %v505_v49 }
 0x2ad   :  { %v2893_v51 = vpop.permute.xlu2 %2892 }
 0x2ae   :  { %v2895_v52 = vunpack.i.h.bf16 %v2893_v51  ;;  %v2894_v53 = vunpack.i.l.bf16 %v2893_v51  ;;  %v512_v54 = vsel %vm477_vm9, %v507_v50, 0 }
 0x2af   :  { %521 = vmatpush.bf16.xpose.msra.mxu0 %v512_v54 }
 0x2b0   :  { %v438_v55 = vpack.c.bf16 %v2895_v52, %v2895_v52  ;;  %v437_v56 = vpack.c.bf16 %v2894_v53, %v2894_v53 }
 0x2b2   :  { %v566_v57 = vunpack.c.l.b16 %v438_v55  ;;  %v565_v58 = vunpack.c.l.b16 %v437_v56 }
 0x2b4   :  { %v567_v59 = vpack.c.b16 %v566_v57, %v565_v58 }
 0x2b5   :  { %v2908_v60 = vpop.permute.xlu2 %2907 }
 0x2b6   :  { %v2910_v61 = vunpack.i.h.bf16 %v2908_v60  ;;  %v2909_v62 = vunpack.i.l.bf16 %v2908_v60  ;;  %v572_v63 = vsel %vm477_vm9, %v567_v59, 0 }
 0x2b7   :  { %581 = vmatpush.bf16.xpose.msrb.mxu2 %v572_v63  ;;  %v2903_v0 = vpop.permute.xlu1 %2902  ;;  %v2898_v1 = vpop.permute.xlu0 %2897 }
 0x2b8   :  { %v436_v2 = vpack.c.bf16 %v2910_v61, %v2910_v61  ;;  %v435_v25 = vpack.c.bf16 %v2909_v62, %v2909_v62  ;;  %v2905_v5 = vunpack.i.h.bf16 %v2903_v0  ;;  %v2904_v27 = vunpack.i.l.bf16 %v2903_v0 }
 0x2b9   :  { %v2900_v6 = vunpack.i.h.bf16 %v2898_v1  ;;  %v2899_v7 = vunpack.i.l.bf16 %v2898_v1 }
 0x2ba   :  { %v536_v8 = vunpack.c.l.b16 %v436_v2  ;;  %v535_v9 = vunpack.c.l.b16 %v435_v25  ;;  %v410_v10 = vpack.c.bf16 %v2905_v5, %v2905_v5  ;;  %v409_v11 = vpack.c.bf16 %v2904_v27, %v2904_v27 }
 0x2bb   :  { %v406_v12 = vpack.c.bf16 %v2900_v6, %v2900_v6  ;;  %v405_v13 = vpack.c.bf16 %v2899_v7, %v2899_v7 }
 0x2bc   :  { %v537_v14 = vpack.c.b16 %v536_v8, %v535_v9  ;;  %v561_v15 = vunpack.c.l.b16 %v410_v10  ;;  %v560_v16 = vunpack.c.l.b16 %v409_v11 }
 0x2bd   :  { %v501_v17 = vunpack.c.l.b16 %v406_v12  ;;  %v500_v18 = vunpack.c.l.b16 %v405_v13  ;;  %v2913_v23 = vpop.permute.xlu2 %2912 }
 0x2be   :  { %v562_v19 = vpack.c.b16 %v561_v15, %v560_v16  ;;  %v542_v20 = vsel %vm477_vm9, %v537_v14, 0  ;;  %v2915_v24 = vunpack.i.h.bf16 %v2913_v23  ;;  %v2914_v26 = vunpack.i.l.bf16 %v2913_v23 }
 0x2bf   :  { %v502_v22 = vpack.c.b16 %v501_v17, %v500_v18  ;;  %551 = vmatpush.bf16.xpose.msrb.mxu0 %v542_v20 }
 0x2c0   :  { %2403 = vmatmul.msk.bf16.vlgmr.msrb.gmra.mxu2 %vm477_vm9, %v562_v19  ;;  %v408_v28 = vpack.c.bf16 %v2915_v24, %v2915_v24  ;;  %v407_v30 = vpack.c.bf16 %v2914_v26, %v2914_v26 }
 0x2c1   :  { %2401 = vmatmul.msk.bf16.vlgmr.msra.gmra.mxu0 %vm477_vm9, %v502_v22 }
 0x2c2   :  { %v531_v31 = vunpack.c.l.b16 %v408_v28  ;;  %v530_v32 = vunpack.c.l.b16 %v407_v30 }
 0x2c4   :  { %v532_v33 = vpack.c.b16 %v531_v31, %v530_v32 }
 0x2d1   :  { %2402 = vmatmul.msk.bf16.vlgmr.msrb.gmra.mxu0 %vm477_vm9, %v532_v33 }
 0x2d4   :  { %v493_v34 = vpop.f32.mrf.mxu0 }
 0x2d5   :  { %v588_v36 = vmul.f32 0.17677669, %v493_v34 }
 0x2d7   :  { %v3445_v37 = vadd.f32 %v588_v36, %v170_v35 }
 0x2d9   :  { %v605_v38 = vsel %vm604_vm11, %v3445_v37, -inf }
 0x2da   :  { %606 = vmax.xlane.f32.xlu1 %v605_v38 }
 0x2dc   :  { %v495_v39 = vpop.f32.mrf.mxu0 }
 0x2dd   :  { %v589_v41 = vmul.f32 0.17677669, %v495_v39 }
 0x2df   :  { %v3452_v42 = vadd.f32 %v589_v41, %v171_v40 }
 0x2e1   :  { %v609_v43 = vsel %vm608_vm12, %v3452_v42, -inf }
 0x2e2   :  { %610 = vmax.xlane.f32.xlu0 %v609_v43 }
 0x33e   :  { %v523_v44 = vpop.f32.mrf.mxu0 }
 0x33f   :  { %v590_v45 = vmul.f32 0.17677669, %v523_v44 }
 0x341   :  { %v598_v46 = vadd.f32 %v590_v45, %v170_v35 }
 0x343   :  { %v583_v47 = vpop.f32.mrf.mxu2  ;;  %v612_v48 = vsel %vm604_vm11, %v598_v46, -inf }
 0x344   :  { %v594_v49 = vmul.f32 0.17677669, %v583_v47  ;;  %613 = vmax.xlane.f32.xlu1 %v612_v48 }
 0x346   :  { %v525_v50 = vpop.f32.mrf.mxu0  ;;  %v602_v51 = vadd.f32 %v594_v49, %v170_v35 }
 0x347   :  { %v591_v52 = vmul.f32 0.17677669, %v525_v50 }
 0x348   :  { %v624_v53 = vsel %vm604_vm11, %v602_v51, -inf }
 0x349   :  { %625 = vmax.xlane.f32.xlu2 %v624_v53  ;;  %v599_v56 = vadd.f32 %v591_v52, %v171_v40 }
 0x34b   :  { %v585_v54 = vpop.f32.mrf.mxu2  ;;  %v615_v61 = vsel %vm608_vm12, %v599_v56, -inf }
 0x34c   :  { %v595_v55 = vmul.f32 0.17677669, %v585_v54 }
 0x34d   :  { %v607_v5 = vpop.xlane.xlu1 %606 }
 0x34e   :  { %v553_v57 = vpop.f32.mrf.mxu0  ;;  %v603_v58 = vadd.f32 %v595_v55, %v171_v40  ;;  %v630_v41 = vsub.f32 %v3445_v37, %v607_v5 }
 0x34f   :  { %v592_v59 = vmul.f32 0.17677669, %v553_v57 }
 0x350   :  { %v627_v60 = vsel %vm608_vm12, %v603_v58, -inf  ;;  %v638_v43 = vmul.f32 1.442695, %v630_v41 }
 0x351   :  { %628 = vmax.xlane.f32.xlu0 %v627_v60  ;;  %616 = vmax.xlane.f32.xlu2 %v615_v61  ;;  %v600_v62 = vadd.f32 %v592_v59, %v170_v35 }
 0x353   :  { %v618_v1 = vsel %vm604_vm11, %v600_v62, -inf }
 0x355   :  { %v611_v8 = vpop.xlane.xlu0 %610 }
 0x356   :  { %v555_v63 = vpop.f32.mrf.mxu0  ;;  %v631_v44 = vsub.f32 %v3452_v42, %v611_v8 }
 0x357   :  { %v593_v0 = vmul.f32 0.17677669, %v555_v63 }
 0x358   :  { %v640_v45 = vmul.f32 1.442695, %v631_v44 }
 0x359   :  { %619 = vmax.xlane.f32.xlu0 %v618_v1  ;;  %v601_v2 = vadd.f32 %v593_v0, %v171_v40 }
 0x35b   :  { %v621_v25 = vsel %vm608_vm12, %v601_v2, -inf }
 0x35c   :  { %622 = vmax.xlane.f32.xlu2 %v621_v25 }
 0x3b7   :  { %v614_v27 = vpop.xlane.xlu1 %613 }
 0x3b8   :  { %v632_v6 = vsub.f32 %v598_v46, %v614_v27 }
 0x3ba   :  { %v642_v7 = vmul.f32 1.442695, %v632_v6 }
 0x3bc   :  { %3029 = vpow2.f32 %v642_v7  ;;  %v626_v9 = vpop.xlane.xlu2 %625 }
 0x3bd   :  { %v636_v10 = vsub.f32 %v602_v51, %v626_v9 }
 0x3bf   :  { %v650_v11 = vmul.f32 1.442695, %v636_v10 }
 0x3c1   :  { %3031 = vpow2.f32 %v650_v11 }
 0x3c2   :  { %v3462_v12 = vpop.eup %3029 }
 0x3c3   :  { %v660_v13 = vsel %vm604_vm11, %v3462_v12, 0.0 }
 0x3c4   :  { %661 = vadd.xlane.f32.xlu0 %v660_v13  ;;  %v629_v14 = vpop.xlane.xlu0 %628  ;;  %v617_v15 = vpop.xlane.xlu2 %616 }
 0x3c5   :  { %v637_v16 = vsub.f32 %v603_v58, %v629_v14  ;;  %v633_v17 = vsub.f32 %v599_v56, %v617_v15 }
 0x3c7   :  { %v3032_v18 = vpop.eup %3031  ;;  %v652_v19 = vmul.f32 1.442695, %v637_v16  ;;  %v644_v20 = vmul.f32 1.442695, %v633_v17 }
 0x3c8   :  { %v672_v22 = vsel %vm604_vm11, %v3032_v18, 0.0 }
 0x3c9   :  { %3033 = vpow2.f32 %v652_v19  ;;  %673 = vadd.xlane.f32.xlu2 %v672_v22 }
 0x3ca   :  { %3035 = vpow2.f32 %v644_v20 }
 0x3cc   :  { %v620_v23 = vpop.xlane.xlu0 %619 }
 0x3cd   :  { %v634_v24 = vsub.f32 %v600_v62, %v620_v23 }
 0x3cf   :  { %v3034_v26 = vpop.eup %3033  ;;  %v646_v28 = vmul.f32 1.442695, %v634_v24  ;;  %v623_v30 = vpop.xlane.xlu2 %622 }
 0x3d0   :  { %v3467_v31 = vpop.eup %3035  ;;  %v635_v32 = vsub.f32 %v601_v2, %v623_v30  ;;  %v675_v33 = vsel %vm608_vm12, %v3034_v26, 0.0 }
 0x3d1   :  { %3037 = vpow2.f32 %v646_v28  ;;  %676 = vadd.xlane.f32.xlu1 %v675_v33  ;;  %v663_v34 = vsel %vm608_vm12, %v3467_v31, 0.0 }
 0x3d2   :  { %v648_v35 = vmul.f32 1.442695, %v635_v32  ;;  %664 = vadd.xlane.f32.xlu2 %v663_v34 }
 0x3d4   :  { %3039 = vpow2.f32 %v648_v35 }
 0x3d5   :  { %3041 = vpow2.f32 %v638_v43 }
 0x3d6   :  { %3043 = vpow2.f32 %v640_v45 }
 0x3d7   :  { %v3038_v36 = vpop.eup %3037 }
 0x3d8   :  { %v666_v38 = vsel %vm604_vm11, %v3038_v36, 0.0 }
 0x3d9   :  { %667 = vadd.xlane.f32.xlu1 %v666_v38 }
 0x3da   :  { %v3040_v39 = vpop.eup %3039 }
 0x3db   :  { %v669_v40 = vsel %vm608_vm12, %v3040_v39, 0.0  ;;  %v3482_v46 = vpop.eup %3041 }
 0x3dc   :  { %670 = vadd.xlane.f32.xlu0 %v669_v40  ;;  %v654_v47 = vsel %vm604_vm11, %v3482_v46, 0.0  ;;  %v3486_v48 = vpop.eup %3043 }
 0x3dd   :  { %v657_v49 = vsel %vm608_vm12, %v3486_v48, 0.0 }
 0x3ea   :  { %2917 = vrot.lane.b32.xlu2 %v3427_v29, %s3112_s25 }
 0x3f0   :  { %2927 = vrot.lane.b32.xlu0 %v3427_v29, %s3114_s26 }
 0x3f2   :  { %2922 = vrot.lane.b32.xlu1 %v3427_v29, %s3113_s4 }
 0x413   :  { %655 = vadd.xlane.f32.xlu2 %v654_v47 }
 0x41a   :  { %658 = vadd.xlane.f32.xlu0 %v657_v49 }
 0x437   :  { %v662_v52 = vpop.xlane.xlu0 %661 }
 0x43c   :  { %v674_v29 = vpop.xlane.xlu2 %673 }
 0x43d   :  { %3045 = vrcp.f32 %v674_v29 }
 0x443   :  { %v3046_v50 = vpop.eup %3045 }
 0x444   :  { %v677_v37 = vpop.xlane.xlu1 %676  ;;  %v692_v55 = vmul.f32 %v3046_v50, %v3032_v18 }
 0x445   :  { %3047 = vrcp.f32 %v677_v37  ;;  %v665_v42 = vpop.xlane.xlu2 %664 }
 0x446   :  { %v700_v61 = vpack.c.bf16 %v692_v55, %v692_v55 }
 0x448   :  { %v795_v25 = vunpack.c.l.b16 %v700_v61 }
 0x44b   :  { %v3048_v51 = vpop.eup %3047 }
 0x44c   :  { %v693_v53 = vmul.f32 %v3048_v51, %v3034_v26  ;;  %v668_v5 = vpop.xlane.xlu1 %667 }
 0x44d   :  { %v2918_v54 = vpop.permute.xlu2 %2917 }
 0x44e   :  { %v2920_v56 = vunpack.i.h.bf16 %v2918_v54  ;;  %v2919_v57 = vunpack.i.l.bf16 %v2918_v54  ;;  %v701_v58 = vpack.c.bf16 %v693_v53, %v693_v53 }
 0x44f   :  { %v671_v2 = vpop.xlane.xlu0 %670 }
 0x450   :  { %v466_v59 = vpack.c.bf16 %v2920_v56, %v2920_v56  ;;  %v465_v60 = vpack.c.bf16 %v2919_v57, %v2919_v57  ;;  %v796_v0 = vunpack.c.l.b16 %v701_v58  ;;  %3049 = vrcp.f32 %v671_v2 }
 0x451   :  { %3051 = vrcp.f32 %v665_v42 }
 0x452   :  { %v801_v62 = vunpack.c.l.b16 %v466_v59  ;;  %v800_v63 = vunpack.c.l.b16 %v465_v60  ;;  %v797_v6 = vpack.c.b16 %v796_v0, %v795_v25  ;;  %3053 = vrcp.f32 %v668_v5  ;;  %v2816_v25 = vld [vmem:[%s3992_s8 + $0x30] sm:$0xff]  ;;  %v2815_v5 = vld [vmem:[%s3992_s8 + $0x28] sm:$0xff] }
 0x453   :  { %3055 = vrcp.f32 %v662_v52 }
 0x454   :  { %v802_v1 = vpack.c.b16 %v801_v62, %v800_v63 }
 0x456   :  { %v807_v27 = vsel %vm715_vm10, %v802_v1, 0  ;;  %v3050_v7 = vpop.eup %3049 }
 0x457   :  { %816 = vmatpush.bf16.msra.mxu2 %v807_v27  ;;  %v3052_v8 = vpop.eup %3051  ;;  %v691_v10 = vmul.f32 %v3050_v7, %v3040_v39  ;;  %v2814_v27 = vld [vmem:[%s3992_s8 + $0x20] sm:$0xff]  ;;  %v2812_v7 = vld [vmem:[%s3992_s8 + $0x10] sm:$0xff] }
 0x458   :  { %v3054_v9 = vpop.eup %3053  ;;  %v689_v13 = vmul.f32 %v3052_v8, %v3467_v31  ;;  %v2811_v8 = vld [vmem:[%s3992_s8 + $0x8] sm:$0xff] }
 0x459   :  { %v3056_v11 = vpop.eup %3055  ;;  %v690_v14 = vmul.f32 %v3054_v9, %v3038_v36  ;;  %v699_v19 = vpack.c.bf16 %v691_v10, %v691_v10  ;;  %v2810_v9 = vld [vmem:[%s3992_s8] sm:$0xff] }
 0x45a   :  { %2407 = vmatmul.msk.bf16.vlgmr.msra.gmra.mxu2 %vm604_vm11, %v797_v6  ;;  %v688_v18 = vmul.f32 %v3056_v11, %v3462_v12  ;;  %v697_v28 = vpack.c.bf16 %v689_v13, %v689_v13  ;;  %v2813_v6 = vld [vmem:[%s3992_s8 + $0x18] sm:$0xff] }
 0x45b   :  { %v698_v30 = vpack.c.bf16 %v690_v14, %v690_v14  ;;  %v766_v31 = vunpack.c.l.b16 %v699_v19 }
 0x45c   :  { %v696_v38 = vpack.c.bf16 %v688_v18, %v688_v18  ;;  %v736_v41 = vunpack.c.l.b16 %v697_v28 }
 0x45d   :  { %v765_v43 = vunpack.c.l.b16 %v698_v30 }
 0x45e   :  { %v735_v45 = vunpack.c.l.b16 %v696_v38 }
 0x45f   :  { %v767_v49 = vpack.c.b16 %v766_v31, %v765_v43 }
 0x460   :  { %v737_v29 = vpack.c.b16 %v736_v41, %v735_v45 }
 0x462   :  { %v2928_v15 = vpop.permute.xlu0 %2927 }
 0x463   :  { %v2930_v16 = vunpack.i.h.bf16 %v2928_v15  ;;  %v2929_v17 = vunpack.i.l.bf16 %v2928_v15 }
 0x464   :  { %v2923_v20 = vpop.permute.xlu1 %2922 }
 0x465   :  { %v464_v22 = vpack.c.bf16 %v2930_v16, %v2930_v16  ;;  %v463_v23 = vpack.c.bf16 %v2929_v17, %v2929_v17  ;;  %v2925_v24 = vunpack.i.h.bf16 %v2923_v20  ;;  %v2924_v26 = vunpack.i.l.bf16 %v2923_v20 }
 0x467   :  { %v771_v32 = vunpack.c.l.b16 %v464_v22  ;;  %v770_v33 = vunpack.c.l.b16 %v463_v23  ;;  %v462_v34 = vpack.c.bf16 %v2925_v24, %v2925_v24  ;;  %v461_v35 = vpack.c.bf16 %v2924_v26, %v2924_v26 }
 0x469   :  { %v741_v36 = vunpack.c.l.b16 %v462_v34  ;;  %v740_v39 = vunpack.c.l.b16 %v461_v35  ;;  %v772_v40 = vpack.c.b16 %v771_v32, %v770_v33  ;;  %v3008_v34 = vld [vmem:[%s3991_s9] ss:$0 sm:$0xff] }
 0x46b   :  { %v742_v12 = vpack.c.b16 %v741_v36, %v740_v39  ;;  %v777_v44 = vsel %vm715_vm10, %v772_v40, 0 }
 0x46c   :  { %786 = vmatpush.bf16.msrb.mxu1 %v777_v44 }
 0x46d   :  { %v747_v47 = vsel %vm715_vm10, %v742_v12, 0 }
 0x46e   :  { %756 = vmatpush.bf16.msra.mxu0 %v747_v47 }
 0x46f   :  { %2406 = vmatmul.msk.bf16.vlgmr.msrb.gmra.mxu1 %vm604_vm11, %v767_v49 }
 0x471   :  { %2405 = vmatmul.msk.bf16.vlgmr.msra.gmra.mxu0 %vm604_vm11, %v737_v29 }
 0x486   :  { %v656_v37 = vpop.xlane.xlu2 %655 }
 0x487   :  { %3057 = vrcp.f32 %v656_v37 }
 0x48d   :  { %v659_v42 = vpop.xlane.xlu0 %658  ;;  %v3058_v50 = vpop.eup %3057 }
 0x48e   :  { %3059 = vrcp.f32 %v659_v42  ;;  %v686_v51 = vmul.f32 %v3058_v50, %v3482_v46  ;;  %v2824_v42 = vld [vmem:[%s3996_s12 + $0x30] sm:$0xff]  ;;  %v2823_v50 = vld [vmem:[%s3996_s12 + $0x28] sm:$0xff] }
 0x490   :  { %v694_v53 = vpack.c.bf16 %v686_v51, %v686_v51  ;;  %v2822_v51 = vld [vmem:[%s3996_s12 + $0x20] sm:$0xff] }
 0x492   :  { %v704_v56 = vunpack.c.l.b16 %v694_v53  ;;  %v2820_v53 = vld [vmem:[%s3996_s12 + $0x10] sm:$0xff] }
 0x494   :  { %v3060_v52 = vpop.eup %3059 }
 0x495   :  { %v687_v54 = vmul.f32 %v3060_v52, %v3486_v48  ;;  %v2817_v48 = vld [vmem:[%s3992_s8 + $0x38] sm:$0xff] }
 0x496   :  { %924 = vmatpush.bf16.msra.mxu3 %v2817_v48  ;;  %v2821_v52 = vld [vmem:[%s3996_s12 + $0x18] sm:$0xff] }
 0x497   :  { %v695_v55 = vpack.c.bf16 %v687_v54, %v687_v54 }
 0x499   :  { %v705_v57 = vunpack.c.l.b16 %v695_v55 }
 0x49a   :  { %925 = vmatpush.bf16.msra.mxu3 %v2816_v25 }
 0x49b   :  { %v706_v58 = vpack.c.b16 %v705_v57, %v704_v56  ;;  %v2819_v56 = vld [vmem:[%s3996_s12 + $0x8] sm:$0xff] }
 0x49d   :  { %2404 = vmatmul.msk.bf16.vlgmr.msrb.gmra.mxu3 %vm604_vm11, %v706_v58  ;;  %v2818_v58 = vld [vmem:[%s3996_s12] sm:$0xff] }
 0x49e   :  { %926 = vmatpush.bf16.msra.mxu3 %v2815_v5 }
 0x4a2   :  { %927 = vmatpush.bf16.msra.mxu3 %v2814_v27 }
 0x4a6   :  { %928 = vmatpush.bf16.msra.mxu3 %v2813_v6 }
 0x4aa   :  { %929 = vmatpush.bf16.msra.mxu3 %v2812_v7 }
 0x4ae   :  { %930 = vmatpush.bf16.msra.mxu3 %v2811_v8 }
 0x4b2   :  { %931 = vmatpush.bf16.msra.mxu3 %v2810_v9  ;;  %v3009_v9 = vld [vmem:[%s3993_s10] ss:$0 sm:$0xff] }
 0x4dd   :  { %v818_v63 = vpop.f32.mrf.mxu2 }
 0x4e5   :  { %v820_v46 = vpop.f32.mrf.mxu2 }
 0x4e6   :  { %v2941_v2 = vpack.i.bf16 %v820_v46, %v818_v63 }
 0x4ec   :  { %v788_v60 = vpop.f32.mrf.mxu1 }
 0x4ee   :  { %v758_v59 = vpop.f32.mrf.mxu0 }
 0x4f4   :  { %v790_v0 = vpop.f32.mrf.mxu1 }
 0x4f5   :  { %v2936_v1 = vpack.i.bf16 %v790_v0, %v788_v60 }
 0x4f6   :  { %v760_v61 = vpop.f32.mrf.mxu0 }
 0x4f7   :  { %v2931_v62 = vpack.i.bf16 %v760_v61, %v758_v59 }
 0x4f9   :  { %2932 = vrot.lane.b32.xlu1 %v2931_v62, %s3112_s25 }
 0x501   :  { %2937 = vrot.lane.b32.xlu1 %v2936_v1, %s3114_s26 }
 0x509   :  { %2942 = vrot.lane.b32.xlu1 %v2941_v2, %s3113_s4 }
 0x520   :  { %v728_v11 = vpop.f32.mrf.mxu3 }
 0x528   :  { %v730_v18 = vpop.f32.mrf.mxu3 }
 0x56b   :  { %v2933_v10 = vpop.permute.xlu1 %2932 }
 0x56c   :  { %v2935_v14 = vunpack.i.h.bf16 %v2933_v10  ;;  %v2934_v15 = vunpack.i.l.bf16 %v2933_v10 }
 0x56e   :  { %v847_v20 = vsel %vm477_vm9, %v728_v11, %v2934_v15  ;;  %v848_v22 = vsel %vm477_vm9, %v730_v18, %v2935_v14  ;;  %v3010_v15 = vld [vmem:[%s3994_s11] ss:$0 sm:$0xff] }
 0x573   :  { %v2938_v13 = vpop.permute.xlu1 %2937 }
 0x574   :  { %v2940_v16 = vunpack.i.h.bf16 %v2938_v13  ;;  %v2939_v17 = vunpack.i.l.bf16 %v2938_v13 }
 0x576   :  { %v850_v26 = vsel %vm849_vm13, %v847_v20, %v2939_v17  ;;  %v851_v28 = vsel %vm849_vm13, %v848_v22, %v2940_v16  ;;  %v2829_v20 = vld [vmem:[%s3998_s14 + $0x18] sm:$0xff]  ;;  %v2828_v22 = vld [vmem:[%s3998_s14 + $0x10] sm:$0xff] }
 0x577   :  { %1123 = vmatpush.bf16.msra.mxu1 %v2829_v20 }
 0x57b   :  { %v2943_v19 = vpop.permute.xlu1 %2942  ;;  %1124 = vmatpush.bf16.msra.mxu1 %v2828_v22 }
 0x57c   :  { %v2945_v23 = vunpack.i.h.bf16 %v2943_v19  ;;  %v2944_v24 = vunpack.i.l.bf16 %v2943_v19 }
 0x57e   :  { %v854_v30 = vsel %vm852_vm14, %v851_v28, %v2945_v23  ;;  %v853_v32 = vsel %vm852_vm14, %v850_v26, %v2944_v24  ;;  %v2827_v23 = vld [vmem:[%s3998_s14 + $0x8] sm:$0xff]  ;;  %v2826_v24 = vld [vmem:[%s3998_s14] sm:$0xff] }
 0x57f   :  { %v855_v33 = vpack.c.bf16 %v854_v30, %v853_v32  ;;  %1125 = vmatpush.bf16.msra.mxu1 %v2827_v23  ;;  %v3011_v28 = vld [vmem:[%s3995_s13] ss:$0 sm:$0xff]  ;;  %v2560_v23 = vld [vmem:[%s3988_s6 + $0x108] sm:$0xf] }
 0x581   :  { %932 = vmatmul.bf16.vlgmr.msra.gmra.mxu3 %v855_v33 }
 0x583   :  { %1126 = vmatpush.bf16.msra.mxu1 %v2826_v24  ;;  %v2840_v24 = vld [vmem:[%s3988_s6 + $0x110] sm:$0xf0] }
 0x604   :  { %v933_v35 = vpop.f32.mrf.mxu3 }
 0x605   :  { %v934_v38 = vadd.f32 %v3008_v34, %v933_v35 }
 0x607   :  { %v938_v31 = vadd.f32 %v934_v38, %v3416_v3 }
 0x609   :  { %942 = vadd.xlane.f32.xlu2 %v938_v31 }
 0x60c   :  { %v935_v36 = vpop.f32.mrf.mxu3 }
 0x60d   :  { %v936_v39 = vadd.f32 %v3008_v34, %v935_v36 }
 0x60f   :  { %v939_v40 = vadd.f32 %v936_v39, %v3418_v4  ;;  %v2825_v4 = vld [vmem:[%s3996_s12 + $0x38] sm:$0xff] }
 0x610   :  { %1063 = vmatpush.bf16.msrb.mxu0 %v2825_v4 }
 0x611   :  { %v944_v41 = vsel %vm82_vm0, %v939_v40, 0.0 }
 0x612   :  { %945 = vadd.xlane.f32.xlu1 %v944_v41 }
 0x614   :  { %1064 = vmatpush.bf16.msrb.mxu0 %v2824_v42 }
 0x618   :  { %1065 = vmatpush.bf16.msrb.mxu0 %v2823_v50 }
 0x61c   :  { %1066 = vmatpush.bf16.msrb.mxu0 %v2822_v51  ;;  %v2608_v51 = vld [vmem:[%s3988_s6 + $0x168] sm:$0xf] }
 0x620   :  { %1067 = vmatpush.bf16.msrb.mxu0 %v2821_v52  ;;  %v2852_v52 = vld [vmem:[%s3988_s6 + $0x170] sm:$0xf0] }
 0x624   :  { %1068 = vmatpush.bf16.msrb.mxu0 %v2820_v53  ;;  %v2851_v53 = vld [vmem:[%s3988_s6 + $0x16c] sm:$0xf] }
 0x628   :  { %1069 = vmatpush.bf16.msrb.mxu0 %v2819_v56  ;;  %v2616_v56 = vld [vmem:[%s3988_s6 + $0x170] sm:$0xf] }
 0x62c   :  { %1070 = vmatpush.bf16.msrb.mxu0 %v2818_v58 }
 0x67c   :  { %v943_v43 = vpop.xlane.xlu2 %942 }
 0x67d   :  { %v947_v12 = vmul.f32 %v943_v43, %v3249_v21 }
 0x67f   :  { %v949_v44 = vsub.f32 %v938_v31, %v947_v12  ;;  %v3012_v31 = vld [vmem:[%s3997_s15] ss:$0 sm:$0xff] }
 0x681   :  { %v951_v45 = vmul.f32 %v949_v44, %v949_v44 }
 0x683   :  { %953 = vadd.xlane.f32.xlu0 %v951_v45 }
 0x685   :  { %v946_v47 = vpop.xlane.xlu1 %945 }
 0x686   :  { %v948_v49 = vmul.f32 %v946_v47, %v3249_v21 }
 0x688   :  { %v950_v29 = vsub.f32 %v939_v40, %v948_v49 }
 0x68a   :  { %v952_v37 = vmul.f32 %v950_v29, %v950_v29 }
 0x68c   :  { %v955_v3 = vsel %vm82_vm0, %v952_v37, 0.0 }
 0x68d   :  { %956 = vadd.xlane.f32.xlu2 %v955_v3 }
 0x6f6   :  { %v954_v54 = vpop.xlane.xlu0 %953 }
 0x6f7   :  { %v958_v55 = vmul.f32 %v954_v54, %v3249_v21  ;;  %v2609_v54 = vor.u32 %v2852_v52, %v2608_v51  ;;  %v2544_v51 = vld [vmem:[%s3988_s6 + $0xe0] sm:$0xf]  ;;  %v2835_v52 = vld [vmem:[%s3988_s6 + $0xe8] sm:$0xf0] }
 0x6f9   :  { %v960_v57 = vadd.f32 1e-05, %v958_v55  ;;  %v2610_v55 = vld [vmem:[%s3988_s6 + $0x174] sm:$0xf0]  ;;  %1360 = vmatpush.bf16.msrb.mxu2 %v2609_v54  ;;  %v2545_v54 = vor.u32 %v2835_v52, %v2544_v51 }
 0x6fa   :  { %v2613_v58 = vor.u32 %v2851_v53, %v2610_v55  ;;  %v2524_v55 = vld [vmem:[%s3988_s6 + $0xc0] sm:$0xf] }
 0x6fb   :  { %3061 = vrsqrt.f32 %v960_v57  ;;  %vm968_vm1 = vweird.f32 %v960_v57 }
 0x6fc   :  { %1374 = vmatpush.bf16.msrb.mxu1 %v2613_v58 }
 0x700   :  { %v957_v59 = vpop.xlane.xlu2 %956 }
 0x701   :  { %v3062_v60 = vpop.eup %3061  ;;  %v959_v61 = vmul.f32 %v957_v59, %v3249_v21 }
 0x702   :  { %v963_v62 = vmul.f32 %v3062_v60, %v960_v57  ;;  %vm969_vm15 = vweird.f32 %v3062_v60  ;;  %v2853_v57 = vld [vmem:[%s3988_s6 + $0x178] sm:$0xf0] }
 0x703   :  { %v961_v63 = vadd.f32 1e-05, %v959_v61  ;;  %vm970_vm2 = vmor %vm968_vm1, %vm969_vm15  ;;  %v2617_v59 = vor.u32 %v2853_v57, %v2616_v56  ;;  %v2849_v61 = vld [vmem:[%s3988_s6 + $0x158] sm:$0xf0]  ;;  %v2831_v56 = vld [vmem:[%s3988_s6 + $0xc8] sm:$0xf0] }
 0x704   :  { %v964_v0 = vmul.f32 %v3062_v60, %v963_v62  ;;  %v2848_v62 = vld [vmem:[%s3988_s6 + $0x154] sm:$0xf]  ;;  %v2830_v57 = vld [vmem:[%s3988_s6 + $0xc4] sm:$0xf] }
 0x705   :  { %3063 = vrsqrt.f32 %v961_v63  ;;  %vm978_vm4 = vweird.f32 %v961_v63  ;;  %1388 = vmatpush.bf16.msrb.mxu3 %v2617_v59  ;;  %v2525_v59 = vor.u32 %v2831_v56, %v2524_v55 }
 0x706   :  { %v965_v1 = vmul.f32 0.5, %v964_v0  ;;  %v2598_v0 = vld [vmem:[%s3988_s6 + $0x15c] sm:$0xf0] }
 0x708   :  { %v966_v46 = vsub.f32 1.5, %v965_v1  ;;  %v2604_v1 = vld [vmem:[%s3988_s6 + $0x158] sm:$0xf] }
 0x70a   :  { %v967_v48 = vmul.f32 %v3062_v60, %v966_v46  ;;  %v2850_v46 = vld [vmem:[%s3988_s6 + $0x160] sm:$0xf0] }
 0x70b   :  { %v3064_v2 = vpop.eup %3063 }
 0x70c   :  { %v973_v25 = vmul.f32 %v3064_v2, %v961_v63  ;;  %v971_v27 = vsel %vm970_vm2, %v3062_v60, %v967_v48  ;;  %vm979_vm3 = vweird.f32 %v3064_v2  ;;  %v2596_v60 = vld [vmem:[%s3988_s6 + $0x150] sm:$0xf]  ;;  %v2605_v48 = vor.u32 %v2850_v46, %v2604_v1 }
 0x70d   :  { %v982_v8 = vmul.f32 %v971_v27, %v949_v44  ;;  %vm980_vm5 = vmor %vm978_vm4, %vm979_vm3  ;;  %v2597_v63 = vor.u32 %v2849_v61, %v2596_v60  ;;  %v2845_v27 = vld [vmem:[%s3988_s6 + $0x13c] sm:$0xf]  ;;  %v2526_v60 = vld [vmem:[%s3988_s6 + $0xcc] sm:$0xf0] }
 0x70e   :  { %v974_v5 = vmul.f32 %v3064_v2, %v973_v25  ;;  %1389 = vmatpush.bf16.msrb.mxu3 %v2605_v48  ;;  %v2584_v25 = vld [vmem:[%s3988_s6 + $0x138] sm:$0xf]  ;;  %v2532_v61 = vld [vmem:[%s3988_s6 + $0xc8] sm:$0xf] }
 0x70f   :  { %v987_v14 = vmul.f32 %v3009_v9, %v982_v8  ;;  %1361 = vmatpush.bf16.msrb.mxu2 %v2597_v63  ;;  %v2592_v8 = vld [vmem:[%s3988_s6 + $0x140] sm:$0xf]  ;;  %v2832_v63 = vld [vmem:[%s3988_s6 + $0xd0] sm:$0xf0] }
 0x710   :  { %v975_v6 = vmul.f32 0.5, %v974_v5  ;;  %v2846_v5 = vld [vmem:[%s3988_s6 + $0x140] sm:$0xf0] }
 0x711   :  { %v992_v17 = vadd.f32 %v3010_v15, %v987_v14  ;;  %v2843_v14 = vld [vmem:[%s3988_s6 + $0x128] sm:$0xf0] }
 0x712   :  { %v976_v7 = vsub.f32 1.5, %v975_v6  ;;  %v2585_v6 = vor.u32 %v2846_v5, %v2584_v25 }
 0x714   :  { %v977_v10 = vmul.f32 %v3064_v2, %v976_v7  ;;  %v2586_v7 = vld [vmem:[%s3988_s6 + $0x144] sm:$0xf0]  ;;  %1362 = vmatpush.bf16.msrb.mxu2 %v2585_v6 }
 0x716   :  { %v981_v11 = vsel %vm980_vm5, %v3064_v2, %v977_v10  ;;  %v2601_v2 = vor.u32 %v2848_v62, %v2598_v0  ;;  %v2589_v10 = vor.u32 %v2845_v27, %v2586_v7  ;;  %v2529_v62 = vor.u32 %v2830_v57, %v2526_v60 }
 0x717   :  { %v983_v13 = vmul.f32 %v981_v11, %v950_v29  ;;  %v2533_v0 = vor.u32 %v2832_v63, %v2532_v61 }
 0x718   :  { %1375 = vmatpush.bf16.msrb.mxu1 %v2601_v2 }
 0x719   :  { %v988_v16 = vmul.f32 %v3009_v9, %v983_v13  ;;  %v2847_v9 = vld [vmem:[%s3988_s6 + $0x148] sm:$0xf0]  ;;  %v2572_v13 = vld [vmem:[%s3988_s6 + $0x120] sm:$0xf] }
 0x71a   :  { %v2593_v11 = vor.u32 %v2847_v9, %v2592_v8 }
 0x71b   :  { %v993_v18 = vadd.f32 %v3010_v15, %v988_v16  ;;  %v2842_v15 = vld [vmem:[%s3988_s6 + $0x124] sm:$0xf]  ;;  %v2573_v16 = vor.u32 %v2843_v14, %v2572_v13 }
 0x71c   :  { %1376 = vmatpush.bf16.msrb.mxu1 %v2589_v10  ;;  %1390 = vmatpush.bf16.msrb.mxu3 %v2593_v11 }
 0x71d   :  { %v994_v19 = vpack.c.bf16 %v993_v18, %v992_v17  ;;  %1363 = vmatpush.bf16.msrb.mxu2 %v2573_v16  ;;  %v3013_v16 = vld [vmem:[%s3999_s16] ss:$0 sm:$0xff] }
 0x71f   :  { %1071 = vmatmul.bf16.vlgmr.msrb.gmra.mxu0 %v994_v19  ;;  %v2844_v19 = vld [vmem:[%s3988_s6 + $0x130] sm:$0xf0] }
 0x79c   :  { %v1072_v26 = vpop.f32.mrf.mxu0 }
 0x79d   :  { %v1073_v30 = vadd.f32 %v3011_v28, %v1072_v26  ;;  %v2839_v26 = vld [vmem:[%s3988_s6 + $0x10c] sm:$0xf] }
 0x79f   :  { %v1077_v34 = vmax.f32 %v1073_v30, 0.0  ;;  %v2562_v30 = vld [vmem:[%s3988_s6 + $0x114] sm:$0xf0] }
 0x7a4   :  { %v1074_v32 = vpop.f32.mrf.mxu0 }
 0x7a5   :  { %v1075_v33 = vadd.f32 %v3011_v28, %v1074_v32  ;;  %v2561_v28 = vor.u32 %v2840_v24, %v2560_v23  ;;  %v2568_v32 = vld [vmem:[%s3988_s6 + $0x110] sm:$0xf] }
 0x7a7   :  { %v1078_v35 = vmax.f32 %v1075_v33, 0.0  ;;  %v2841_v33 = vld [vmem:[%s3988_s6 + $0x118] sm:$0xf0]  ;;  %1364 = vmatpush.bf16.msrb.mxu2 %v2561_v28 }
 0x7a9   :  { %v1079_v38 = vpack.c.bf16 %v1078_v35, %v1077_v34  ;;  %v2565_v34 = vor.u32 %v2839_v26, %v2562_v30  ;;  %v2569_v35 = vor.u32 %v2841_v33, %v2568_v32 }
 0x7ab   :  { %2488 = vmatmul.msk.bf16.vlgmr.msra.gmra.mxu1 %vm849_vm13, %v1079_v38  ;;  %v2548_v38 = vld [vmem:[%s3988_s6 + $0xf0] sm:$0xf] }
 0x828   :  { %v1128_v36 = vpop.f32.mrf.mxu1 }
 0x829   :  { %v1129_v39 = vadd.f32 %v3012_v31, %v1128_v36  ;;  %v2836_v36 = vld [vmem:[%s3988_s6 + $0xf4] sm:$0xf] }
 0x82b   :  { %v1133_v40 = vadd.f32 %v1129_v39, %v992_v17  ;;  %v2574_v17 = vld [vmem:[%s3988_s6 + $0x12c] sm:$0xf0] }
 0x82c   :  { %v2577_v20 = vor.u32 %v2842_v15, %v2574_v17 }
 0x82d   :  { %1137 = vadd.xlane.f32.xlu2 %v1133_v40 }
 0x82e   :  { %1377 = vmatpush.bf16.msrb.mxu1 %v2577_v20 }
 0x830   :  { %v1130_v41 = vpop.f32.mrf.mxu1 }
 0x831   :  { %v1131_v43 = vadd.f32 %v3012_v31, %v1130_v41  ;;  %v2837_v31 = vld [vmem:[%s3988_s6 + $0xf8] sm:$0xf0]  ;;  %v2556_v41 = vld [vmem:[%s3988_s6 + $0xf8] sm:$0xf] }
 0x832   :  { %1378 = vmatpush.bf16.msrb.mxu1 %v2565_v34  ;;  %v2549_v39 = vor.u32 %v2837_v31, %v2548_v38 }
 0x833   :  { %v1134_v12 = vadd.f32 %v1131_v43, %v993_v18  ;;  %v2580_v18 = vld [vmem:[%s3988_s6 + $0x128] sm:$0xf]  ;;  %v2838_v43 = vld [vmem:[%s3988_s6 + $0x100] sm:$0xf0] }
 0x834   :  { %v2581_v22 = vor.u32 %v2844_v19, %v2580_v18  ;;  %1365 = vmatpush.bf16.msrb.mxu2 %v2549_v39 }
 0x835   :  { %v1139_v44 = vsel %vm82_vm0, %v1134_v12, 0.0 }
 0x836   :  { %1140 = vadd.xlane.f32.xlu0 %v1139_v44  ;;  %1391 = vmatpush.bf16.msrb.mxu3 %v2581_v22  ;;  %v2557_v44 = vor.u32 %v2838_v43, %v2556_v41  ;;  %v3014_v22 = vld [vmem:[%s4000_s17] ss:$0 sm:$0xff] }
 0x83a   :  { %1392 = vmatpush.bf16.msrb.mxu3 %v2569_v35 }
 0x83e   :  { %1393 = vmatpush.bf16.msrb.mxu3 %v2557_v44 }
 0x842   :  { %1394 = vmatpush.bf16.msrb.mxu3 %v2545_v54 }
 0x846   :  { %1395 = vmatpush.bf16.msrb.mxu3 %v2533_v0 }
 0x8a0   :  { %v1138_v45 = vpop.xlane.xlu2 %1137 }
 0x8a1   :  { %v1142_v47 = vmul.f32 %v1138_v45, %v3249_v21 }
 0x8a3   :  { %v3596_v49 = vsub.f32 %v1133_v40, %v1142_v47  ;;  %v2550_v40 = vld [vmem:[%s3988_s6 + $0xfc] sm:$0xf0]  ;;  %v2536_v47 = vld [vmem:[%s3988_s6 + $0xd8] sm:$0xf] }
 0x8a5   :  { %v1146_v29 = vmul.f32 %v3596_v49, %v3596_v49 }
 0x8a7   :  { %1148 = vadd.xlane.f32.xlu0 %v1146_v29  ;;  %v2834_v29 = vld [vmem:[%s3988_s6 + $0xe0] sm:$0xf0] }
 0x8a9   :  { %v1141_v37 = vpop.xlane.xlu0 %1140 }
 0x8aa   :  { %v1143_v3 = vmul.f32 %v1141_v37, %v3249_v21  ;;  %v2833_v37 = vld [vmem:[%s3988_s6 + $0xdc] sm:$0xf] }
 0x8ac   :  { %v3601_v4 = vsub.f32 %v1134_v12, %v1143_v3  ;;  %v2553_v12 = vor.u32 %v2836_v36, %v2550_v40 }
 0x8ae   :  { %v1147_v42 = vmul.f32 %v3601_v4, %v3601_v4  ;;  %1379 = vmatpush.bf16.msrb.mxu1 %v2553_v12 }
 0x8b0   :  { %v1150_v50 = vsel %vm82_vm0, %v1147_v42, 0.0  ;;  %v2537_v42 = vor.u32 %v2834_v29, %v2536_v47 }
 0x8b1   :  { %1151 = vadd.xlane.f32.xlu2 %v1150_v50  ;;  %v2538_v50 = vld [vmem:[%s3988_s6 + $0xe4] sm:$0xf0] }
 0x8b2   :  { %v2541_v53 = vor.u32 %v2833_v37, %v2538_v50  ;;  %1366 = vmatpush.bf16.msrb.mxu2 %v2537_v42 }
 0x8b4   :  { %1380 = vmatpush.bf16.msrb.mxu1 %v2541_v53 }
 0x8b6   :  { %1367 = vmatpush.bf16.msrb.mxu2 %v2525_v59 }
 0x8b8   :  { %1381 = vmatpush.bf16.msrb.mxu1 %v2529_v62 }
 0x91a   :  { %v1149_v45 = vpop.xlane.xlu0 %1148 }
 0x91b   :  { %v1153_v3 = vmul.f32 %v1149_v45, %v3249_v21 }
 0x91d   :  { %v1155_v58 = vadd.f32 1e-05, %v1153_v3 }
 0x91f   :  { %3065 = vrsqrt.f32 %v1155_v58  ;;  %vm1163_vm7 = vweird.f32 %v1155_v58 }
 0x924   :  { %v1152_v1 = vpop.xlane.xlu2 %1151 }
 0x925   :  { %v3066_v46 = vpop.eup %3065  ;;  %v1154_v2 = vmul.f32 %v1152_v1, %v3249_v21 }
 0x926   :  { %v1158_v48 = vmul.f32 %v3066_v46, %v1155_v58  ;;  %vm1164_vm6 = vweird.f32 %v3066_v46 }
 0x927   :  { %v1156_v25 = vadd.f32 1e-05, %v1154_v2  ;;  %vm1165_vm8 = vmor %vm1163_vm7, %vm1164_vm6 }
 0x928   :  { %v1159_v5 = vmul.f32 %v3066_v46, %v1158_v48 }
 0x929   :  { %3067 = vrsqrt.f32 %v1156_v25  ;;  %vm1173_vm1 = vweird.f32 %v1156_v25 }
 0x92a   :  { %v1160_v27 = vmul.f32 0.5, %v1159_v5 }
 0x92c   :  { %v1161_v6 = vsub.f32 1.5, %v1160_v27 }
 0x92e   :  { %v1162_v8 = vmul.f32 %v3066_v46, %v1161_v6 }
 0x92f   :  { %v3068_v7 = vpop.eup %3067 }
 0x930   :  { %v1168_v9 = vmul.f32 %v3068_v7, %v1156_v25  ;;  %v1166_v11 = vsel %vm1165_vm8, %v3066_v46, %v1162_v8  ;;  %vm1174_vm15 = vweird.f32 %v3068_v7 }
 0x931   :  { %v1177_v15 = vmul.f32 %v1166_v11, %v3596_v49  ;;  %vm1175_vm2 = vmor %vm1173_vm1, %vm1174_vm15 }
 0x932   :  { %v1169_v10 = vmul.f32 %v3068_v7, %v1168_v9 }
 0x933   :  { %v1182_v20 = vmul.f32 %v3013_v16, %v1177_v15 }
 0x934   :  { %v1170_v13 = vmul.f32 0.5, %v1169_v10 }
 0x935   :  { %v3760_v24 = vadd.f32 %v3014_v22, %v1182_v20 }
 0x936   :  { %v1171_v14 = vsub.f32 1.5, %v1170_v13 }
 0x938   :  { %v1172_v17 = vmul.f32 %v3068_v7, %v1171_v14 }
 0x93a   :  { %v1176_v18 = vsel %vm1175_vm2, %v3068_v7, %v1172_v17 }
 0x93b   :  { %v1178_v19 = vmul.f32 %v1176_v18, %v3601_v4  ;;  %v2521_v4 = vld [vmem:[%s3989_s7 + $0x3] sm:$0x7] }
 0x93c   :  { %v1227_v30 = vperm.slane %v2521_v4, 1  ;;  %v1226_v38 = vperm.slane %v2521_v4, 0  ;;  %v1228_v41 = vperm.slane %v2521_v4, 2 }
 0x93d   :  { %v1183_v23 = vmul.f32 %v3013_v16, %v1178_v19 }
 0x93f   :  { %v3762_v26 = vadd.f32 %v3014_v22, %v1183_v23 }
 0x941   :  { %v1189_v49 = vpack.c.bf16 %v3762_v26, %v3760_v24 }
 0x943   :  { %1368 = vmatmul.bf16.vlgmr.msrb.gmra.mxu2 %v1189_v49  ;;  %1382 = vmatmul.bf16.vlgmr.msrb.gmra.mxu1 %v1189_v49 }
 0x944   :  { %1396 = vmatmul.bf16.vlgmr.msrb.gmra.mxu3 %v1189_v49 }
 0x9c0   :  { %v1383_v28 = vpop.f32.mrf.mxu1 }
 0x9c1   :  { %v1384_v32 = vadd.f32 %v1383_v28, %v1227_v30 }
 0x9c3   :  { %v1450_v36 = vpack.c.bf16 %v1384_v32, %v1384_v32 }
 0x9c5   :  { %v1493_v12 = vunpack.c.l.b16 %v1450_v36 }
 0x9c6   :  { %v1369_v33 = vpop.f32.mrf.mxu2 }
 0x9c7   :  { %v1397_v34 = vpop.f32.mrf.mxu3  ;;  %v1370_v43 = vadd.f32 %v1369_v33, %v1226_v38 }
 0x9c8   :  { %v1385_v35 = vpop.f32.mrf.mxu1  ;;  %v1398_v3 = vadd.f32 %v1397_v34, %v1228_v41 }
 0x9c9   :  { %v1386_v31 = vadd.f32 %v1385_v35, %v1227_v30  ;;  %v1422_v50 = vpack.c.bf16 %v1370_v43, %v1370_v43 }
 0x9ca   :  { %v1478_v27 = vpack.c.bf16 %v1398_v3, %v1398_v3 }
 0x9cb   :  { %v2956_v39 = vpack.i.bf16 %v1386_v31, %v1384_v32  ;;  %v1451_v40 = vpack.c.bf16 %v1386_v31, %v1386_v31  ;;  %v1488_v56 = vunpack.c.l.b16 %v1422_v50 }
 0x9cc   :  { %v1725_v11 = vunpack.c.l.b16 %v1478_v27 }
 0x9cd   :  { %2957 = vrot.lane.b32.xlu2 %v2956_v39, %s3114_s26  ;;  %2947 = vrot.lane.b32.xlu0 %v2956_v39, %s3113_s4  ;;  %v1494_v44 = vunpack.c.l.b16 %v1451_v40 }
 0x9ce   :  { %v1371_v45 = vpop.f32.mrf.mxu2 }
 0x9cf   :  { %v1372_v47 = vadd.f32 %v1371_v45, %v1226_v38  ;;  %v1399_v29 = vpop.f32.mrf.mxu3  ;;  %v1495_v37 = vpack.c.b16 %v1494_v44, %v1493_v12 }
 0x9d0   :  { %v1400_v42 = vadd.f32 %v1399_v29, %v1228_v41 }
 0x9d1   :  { %v1423_v51 = vpack.c.bf16 %v1372_v47, %v1372_v47  ;;  %v1500_v52 = vsel %vm477_vm9, %v1495_v37, 0  ;;  %v2951_v53 = vpack.i.bf16 %v1372_v47, %v1370_v43 }
 0x9d2   :  { %1509 = vmatpush.bf16.xpose.msra.mxu0 %v1500_v52  ;;  %v3772_v54 = vpack.i.bf16 %v1400_v42, %v1398_v3  ;;  %v1479_v2 = vpack.c.bf16 %v1400_v42, %v1400_v42 }
 0x9d3   :  { %v1489_v55 = vunpack.c.l.b16 %v1423_v51  ;;  %2952 = vrot.lane.b32.xlu1 %v2951_v53, %s3113_s4 }
 0x9d4   :  { %v1726_v8 = vunpack.c.l.b16 %v1479_v2 }
 0x9d5   :  { %2962 = vrot.lane.b32.xlu0 %v2956_v39, %s3112_s25  ;;  %v1490_v57 = vpack.c.b16 %v1489_v55, %v1488_v56 }
 0x9d6   :  { %v1727_v17 = vpack.c.b16 %v1726_v8, %v1725_v11 }
 0x9d8   :  { %v1732_v30 = vsel %vm715_vm10, %v1727_v17, 0 }
 0x9d9   :  { %2618 = vmatmul.msk.bf16.vlgmr.msra.gmra.mxu0 %vm477_vm9, %v1490_v57 }
 0x9db   :  { %2967 = vrot.lane.b32.xlu1 %v2951_v53, %s3114_s26 }
 0x9dd   :  { %2972 = vrot.lane.b32.xlu0 %v2951_v53, %s3112_s25 }
 0xa27   :  { %v2958_v58 = vpop.permute.xlu2 %2957 }
 0xa28   :  { %v2960_v59 = vunpack.i.h.bf16 %v2958_v58  ;;  %v2959_v60 = vunpack.i.l.bf16 %v2958_v58 }
 0xa2a   :  { %v1455_v61 = vpack.c.bf16 %v2960_v59, %v2960_v59  ;;  %v1454_v62 = vpack.c.bf16 %v2959_v60, %v2959_v60 }
 0xa2c   :  { %v1554_v63 = vunpack.c.l.b16 %v1455_v61  ;;  %v1553_v0 = vunpack.c.l.b16 %v1454_v62  ;;  %v3109_v62 = vld [vmem:[%s3990_s2] sm:$0xff] }
 0xa2e   :  { %v1555_v1 = vpack.c.b16 %v1554_v63, %v1553_v0 }
 0xa30   :  { %v1560_v46 = vsel %vm477_vm9, %v1555_v1, 0 }
 0xa31   :  { %1569 = vmatpush.bf16.xpose.msrb.mxu0 %v1560_v46 }
 0xa3f   :  { %v2948_v48 = vpop.permute.xlu0 %2947 }
 0xa40   :  { %v2950_v25 = vunpack.i.h.bf16 %v2948_v48  ;;  %v2949_v5 = vunpack.i.l.bf16 %v2948_v48 }
 0xa42   :  { %v1453_v6 = vpack.c.bf16 %v2950_v25, %v2950_v25  ;;  %v1452_v7 = vpack.c.bf16 %v2949_v5, %v2949_v5 }
 0xa44   :  { %v1524_v9 = vunpack.c.l.b16 %v1453_v6  ;;  %v1523_v10 = vunpack.c.l.b16 %v1452_v7  ;;  %v3110_v6 = vld [vmem:[%s3990_s2 + $0x8] sm:$0xf] }
 0xa45   :  { %v2953_v13 = vpop.permute.xlu1 %2952 }
 0xa46   :  { %v1525_v14 = vpack.c.b16 %v1524_v9, %v1523_v10  ;;  %v2955_v15 = vunpack.i.h.bf16 %v2953_v13  ;;  %v2954_v16 = vunpack.i.l.bf16 %v2953_v13 }
 0xa47   :  { %v2963_v18 = vpop.permute.xlu0 %2962 }
 0xa48   :  { %v1425_v19 = vpack.c.bf16 %v2955_v15, %v2955_v15  ;;  %v1424_v20 = vpack.c.bf16 %v2954_v16, %v2954_v16  ;;  %v2965_v22 = vunpack.i.h.bf16 %v2963_v18  ;;  %v2964_v23 = vunpack.i.l.bf16 %v2963_v18 }
 0xa49   :  { %v1530_v49 = vsel %vm477_vm9, %v1525_v14, 0 }
 0xa4a   :  { %v1457_v4 = vpack.c.bf16 %v2965_v22, %v2965_v22  ;;  %v1456_v28 = vpack.c.bf16 %v2964_v23, %v2964_v23  ;;  %1539 = vmatpush.bf16.xpose.msra.mxu2 %v1530_v49  ;;  %v1519_v32 = vunpack.c.l.b16 %v1425_v19  ;;  %v1518_v33 = vunpack.c.l.b16 %v1424_v20 }
 0xa4c   :  { %v1584_v34 = vunpack.c.l.b16 %v1457_v4  ;;  %v1583_v35 = vunpack.c.l.b16 %v1456_v28  ;;  %v1520_v40 = vpack.c.b16 %v1519_v32, %v1518_v33 }
 0xa4d   :  { %v2968_v38 = vpop.permute.xlu1 %2967 }
 0xa4e   :  { %v1585_v31 = vpack.c.b16 %v1584_v34, %v1583_v35  ;;  %v2970_v36 = vunpack.i.h.bf16 %v2968_v38  ;;  %v2969_v39 = vunpack.i.l.bf16 %v2968_v38 }
 0xa4f   :  { %v2973_v41 = vpop.permute.xlu0 %2972 }
 0xa50   :  { %v1427_v43 = vpack.c.bf16 %v2970_v36, %v2970_v36  ;;  %v1426_v12 = vpack.c.bf16 %v2969_v39, %v2969_v39  ;;  %v2975_v44 = vunpack.i.h.bf16 %v2973_v41  ;;  %v2974_v45 = vunpack.i.l.bf16 %v2973_v41 }
 0xa51   :  { %2619 = vmatmul.msk.bf16.vlgmr.msra.gmra.mxu2 %vm477_vm9, %v1520_v40  ;;  %v1590_v47 = vsel %vm477_vm9, %v1585_v31, 0 }
 0xa52   :  { %1741 = vmatpush.bf16.msrb.mxu2 %v1732_v30  ;;  %v1549_v29 = vunpack.c.l.b16 %v1427_v43  ;;  %v1548_v37 = vunpack.c.l.b16 %v1426_v12  ;;  %v1429_v3 = vpack.c.bf16 %v2975_v44, %v2975_v44  ;;  %v1428_v42 = vpack.c.bf16 %v2974_v45, %v2974_v45  ;;  %1599 = vmatpush.bf16.xpose.msra.mxu1 %v1590_v47 }
 0xa54   :  { %v1550_v50 = vpack.c.b16 %v1549_v29, %v1548_v37  ;;  %v1579_v51 = vunpack.c.l.b16 %v1429_v3  ;;  %v1578_v52 = vunpack.c.l.b16 %v1428_v42 }
 0xa56   :  { %v1580_v53 = vpack.c.b16 %v1579_v51, %v1578_v52  ;;  %2620 = vmatmul.msk.bf16.vlgmr.msrb.gmra.mxu0 %vm477_vm9, %v1550_v50  ;;  %v1511_v55 = vpop.f32.mrf.mxu0 }
 0xa57   :  { %v1606_v11 = vmul.f32 0.17677669, %v1511_v55 }
 0xa59   :  { %2621 = vmatmul.msk.bf16.vlgmr.msra.gmra.mxu1 %vm477_vm9, %v1580_v53  ;;  %v1614_v18 = vadd.f32 %v3109_v62, %v1606_v11 }
 0xa5b   :  { %v1622_v22 = vsel %vm604_vm11, %v1614_v18, -inf }
 0xa5e   :  { %v1513_v56 = vpop.f32.mrf.mxu0 }
 0xa5f   :  { %v1607_v19 = vmul.f32 0.17677669, %v1513_v56 }
 0xa61   :  { %v3802_v23 = vadd.f32 %v3110_v6, %v1607_v19 }
 0xa63   :  { %v1625_v49 = vsel %vm608_vm12, %v3802_v23, -inf }
 0xad3   :  { %v1571_v57 = vpop.f32.mrf.mxu0 }
 0xad4   :  { %v1541_v58 = vpop.f32.mrf.mxu2  ;;  %v1610_v59 = vmul.f32 0.17677669, %v1571_v57 }
 0xad5   :  { %v1608_v60 = vmul.f32 0.17677669, %v1541_v58 }
 0xad6   :  { %v1601_v61 = vpop.f32.mrf.mxu1  ;;  %v1618_v63 = vadd.f32 %v3109_v62, %v1610_v59 }
 0xad7   :  { %v3789_v0 = vadd.f32 %v3109_v62, %v1608_v60  ;;  %v1612_v13 = vmul.f32 0.17677669, %v1601_v61 }
 0xad8   :  { %v1634_v1 = vsel %vm604_vm11, %v1618_v63, -inf }
 0xad9   :  { %v1628_v46 = vsel %vm604_vm11, %v3789_v0, -inf  ;;  %1635 = vmax.xlane.f32.xlu0 %v1634_v1  ;;  %v1620_v17 = vadd.f32 %v3109_v62, %v1612_v13 }
 0xada   :  { %1629 = vmax.xlane.f32.xlu2 %v1628_v46 }
 0xadb   :  { %v1573_v2 = vpop.f32.mrf.mxu0  ;;  %v1640_v20 = vsel %vm604_vm11, %v1620_v17, -inf }
 0xadc   :  { %v1543_v48 = vpop.f32.mrf.mxu2  ;;  %v1611_v25 = vmul.f32 0.17677669, %v1573_v2 }
 0xadd   :  { %v1609_v5 = vmul.f32 0.17677669, %v1543_v48 }
 0xade   :  { %v1603_v27 = vpop.f32.mrf.mxu1  ;;  %v1619_v7 = vadd.f32 %v3110_v6, %v1611_v25 }
 0xadf   :  { %v1613_v8 = vmul.f32 0.17677669, %v1603_v27  ;;  %v1617_v9 = vadd.f32 %v3110_v6, %v1609_v5 }
 0xae0   :  { %v1637_v10 = vsel %vm608_vm12, %v1619_v7, -inf }
 0xae1   :  { %v1631_v14 = vsel %vm608_vm12, %v1617_v9, -inf  ;;  %v1621_v15 = vadd.f32 %v3110_v6, %v1613_v8 }
 0xae2   :  { %1632 = vmax.xlane.f32.xlu1 %v1631_v14  ;;  %1638 = vmax.xlane.f32.xlu2 %v1637_v10 }
 0xae3   :  { %v1643_v16 = vsel %vm608_vm12, %v1621_v15, -inf }
 0xae4   :  { %1644 = vmax.xlane.f32.xlu0 %v1643_v16 }
 0xaea   :  { %1641 = vmax.xlane.f32.xlu1 %v1640_v20  ;;  %1623 = vmax.xlane.f32.xlu2 %v1622_v22 }
 0xaf2   :  { %1626 = vmax.xlane.f32.xlu1 %v1625_v49 }
 0xb0b   :  { %2977 = vrot.lane.b32.xlu1 %v3772_v54, %s3113_s4 }
 0xb4c   :  { %v1636_v4 = vpop.xlane.xlu0 %1635 }
 0xb4d   :  { %v1630_v28 = vpop.xlane.xlu2 %1629  ;;  %v1650_v30 = vsub.f32 %v1618_v63, %v1636_v4 }
 0xb4e   :  { %v1648_v47 = vsub.f32 %v3789_v0, %v1630_v28 }
 0xb4f   :  { %v1662_v32 = vmul.f32 1.442695, %v1650_v30 }
 0xb50   :  { %v1658_v51 = vmul.f32 1.442695, %v1648_v47 }
 0xb51   :  { %3069 = vpow2.f32 %v1662_v32 }
 0xb55   :  { %v1633_v33 = vpop.xlane.xlu1 %1632  ;;  %v1639_v34 = vpop.xlane.xlu2 %1638 }
 0xb56   :  { %v1651_v35 = vsub.f32 %v1619_v7, %v1639_v34  ;;  %v1649_v42 = vsub.f32 %v1617_v9, %v1633_v33 }
 0xb57   :  { %v3808_v38 = vpop.eup %3069  ;;  %v1645_v31 = vpop.xlane.xlu0 %1644 }
 0xb58   :  { %v1664_v36 = vmul.f32 1.442695, %v1651_v35  ;;  %v1682_v39 = vsel %vm604_vm11, %v3808_v38, 0.0  ;;  %v1653_v40 = vsub.f32 %v1621_v15, %v1645_v31  ;;  %v1660_v52 = vmul.f32 1.442695, %v1649_v42 }
 0xb59   :  { %1683 = vadd.xlane.f32.xlu0 %v1682_v39 }
 0xb5a   :  { %3071 = vpow2.f32 %v1664_v36  ;;  %v1668_v41 = vmul.f32 1.442695, %v1653_v40 }
 0xb5c   :  { %3073 = vpow2.f32 %v1668_v41 }
 0xb5d   :  { %v1642_v43 = vpop.xlane.xlu1 %1641  ;;  %v1624_v12 = vpop.xlane.xlu2 %1623 }
 0xb5e   :  { %v1652_v44 = vsub.f32 %v1620_v17, %v1642_v43  ;;  %v1646_v45 = vsub.f32 %v1614_v18, %v1624_v12 }
 0xb60   :  { %v1666_v29 = vmul.f32 1.442695, %v1652_v44  ;;  %v1654_v37 = vmul.f32 1.442695, %v1646_v45  ;;  %v3813_v3 = vpop.eup %3071 }
 0xb61   :  { %v1685_v50 = vsel %vm608_vm12, %v3813_v3, 0.0 }
 0xb62   :  { %3075 = vpow2.f32 %v1666_v29  ;;  %1686 = vadd.xlane.f32.xlu2 %v1685_v50  ;;  %v3074_v53 = vpop.eup %3073 }
 0xb63   :  { %3077 = vpow2.f32 %v1654_v37  ;;  %v1691_v58 = vsel %vm608_vm12, %v3074_v53, 0.0 }
 0xb64   :  { %3079 = vpow2.f32 %v1658_v51 }
 0xb65   :  { %3081 = vpow2.f32 %v1660_v52  ;;  %v1627_v0 = vpop.xlane.xlu1 %1626 }
 0xb66   :  { %v1647_v8 = vsub.f32 %v3802_v23, %v1627_v0 }
 0xb68   :  { %v3076_v55 = vpop.eup %3075  ;;  %v1656_v9 = vmul.f32 1.442695, %v1647_v8 }
 0xb69   :  { %v3817_v56 = vpop.eup %3077  ;;  %v1688_v57 = vsel %vm604_vm11, %v3076_v55, 0.0 }
 0xb6a   :  { %1689 = vadd.xlane.f32.xlu0 %v1688_v57  ;;  %v1670_v59 = vsel %vm604_vm11, %v3817_v56, 0.0  ;;  %1692 = vadd.xlane.f32.xlu2 %v1691_v58  ;;  %v3080_v60 = vpop.eup %3079  ;;  %3083 = vpow2.f32 %v1656_v9 }
 0xb6b   :  { %1671 = vadd.xlane.f32.xlu1 %v1670_v59  ;;  %v3082_v61 = vpop.eup %3081  ;;  %v1676_v62 = vsel %vm604_vm11, %v3080_v60, 0.0 }
 0xb6c   :  { %v1679_v63 = vsel %vm608_vm12, %v3082_v61, 0.0 }
 0xb70   :  { %v3831_v10 = vpop.eup %3083 }
 0xb71   :  { %v1673_v11 = vsel %vm608_vm12, %v3831_v10, 0.0 }
 0xb72   :  { %1677 = vadd.xlane.f32.xlu0 %v1676_v62  ;;  %1680 = vadd.xlane.f32.xlu2 %v1679_v63 }
 0xb7d   :  { %v2978_v1 = vpop.permute.xlu1 %2977 }
 0xb7e   :  { %v2980_v46 = vunpack.i.h.bf16 %v2978_v1  ;;  %v2979_v2 = vunpack.i.l.bf16 %v2978_v1 }
 0xb80   :  { %v1481_v48 = vpack.c.bf16 %v2980_v46, %v2980_v46  ;;  %v1480_v25 = vpack.c.bf16 %v2979_v2, %v2979_v2 }
 0xb82   :  { %v1756_v5 = vunpack.c.l.b16 %v1481_v48  ;;  %v1755_v27 = vunpack.c.l.b16 %v1480_v25 }
 0xb84   :  { %v1757_v6 = vpack.c.b16 %v1756_v5, %v1755_v27 }
 0xb86   :  { %2982 = vrot.lane.b32.xlu0 %v3772_v54, %s3114_s26  ;;  %v1762_v7 = vsel %vm715_vm10, %v1757_v6, 0 }
 0xb87   :  { %1771 = vmatpush.bf16.msra.mxu3 %v1762_v7 }
 0xb8a   :  { %2987 = vrot.lane.b32.xlu2 %v3772_v54, %s3112_s25 }
 0xbb0   :  { %1674 = vadd.xlane.f32.xlu0 %v1673_v11 }
 0xbcc   :  { %v1684_v13 = vpop.xlane.xlu0 %1683 }
 0xbd5   :  { %v1687_v14 = vpop.xlane.xlu2 %1686 }
 0xbdd   :  { %v1690_v15 = vpop.xlane.xlu0 %1689  ;;  %v1693_v16 = vpop.xlane.xlu2 %1692 }
 0xbde   :  { %3085 = vrcp.f32 %v1690_v15 }
 0xbdf   :  { %3087 = vrcp.f32 %v1693_v16 }
 0xbe4   :  { %v3086_v54 = vpop.eup %3085 }
 0xbe5   :  { %v1678_v17 = vpop.xlane.xlu0 %1677  ;;  %v1681_v18 = vpop.xlane.xlu2 %1680  ;;  %v1708_v22 = vmul.f32 %v3086_v54, %v3076_v55 }
 0xbe6   :  { %3089 = vrcp.f32 %v1678_v17  ;;  %v3088_v19 = vpop.eup %3087 }
 0xbe7   :  { %3091 = vrcp.f32 %v1681_v18  ;;  %v1709_v49 = vmul.f32 %v3088_v19, %v3074_v53  ;;  %v1716_v35 = vpack.c.bf16 %v1708_v22, %v1708_v22 }
 0xbe8   :  { %3093 = vrcp.f32 %v1687_v14 }
 0xbe9   :  { %3095 = vrcp.f32 %v1684_v13  ;;  %v1717_v36 = vpack.c.bf16 %v1709_v49, %v1709_v49  ;;  %v1810_v29 = vunpack.c.l.b16 %v1716_v35  ;;  %v2860_v49 = vld [vmem:[%s3992_s8 + $0x70] sm:$0xff] }
 0xbeb   :  { %v1811_v37 = vunpack.c.l.b16 %v1717_v36 }
 0xbec   :  { %v3090_v20 = vpop.eup %3089 }
 0xbed   :  { %v3092_v23 = vpop.eup %3091  ;;  %v1704_v4 = vmul.f32 %v3090_v20, %v3080_v60  ;;  %v2988_v30 = vpop.permute.xlu2 %2987  ;;  %v1812_v57 = vpack.c.b16 %v1811_v37, %v1810_v29 }
 0xbee   :  { %v1705_v28 = vmul.f32 %v3092_v23, %v3082_v61  ;;  %v2990_v33 = vunpack.i.h.bf16 %v2988_v30  ;;  %v2989_v34 = vunpack.i.l.bf16 %v2988_v30  ;;  %v3094_v45 = vpop.eup %3093  ;;  %v2857_v30 = vld [vmem:[%s3992_s8 + $0x58] sm:$0xff] }
 0xbef   :  { %v1712_v32 = vpack.c.bf16 %v1704_v4, %v1704_v4  ;;  %v3096_v50 = vpop.eup %3095  ;;  %v1707_v51 = vmul.f32 %v3094_v45, %v3813_v3  ;;  %v2859_v4 = vld [vmem:[%s3992_s8 + $0x68] sm:$0xff] }
 0xbf0   :  { %v1713_v31 = vpack.c.bf16 %v1705_v28, %v1705_v28  ;;  %v1485_v40 = vpack.c.bf16 %v2990_v33, %v2990_v33  ;;  %v1484_v41 = vpack.c.bf16 %v2989_v34, %v2989_v34  ;;  %v1706_v55 = vmul.f32 %v3096_v50, %v3808_v38  ;;  %v1672_v38 = vpop.xlane.xlu1 %1671  ;;  %v2858_v28 = vld [vmem:[%s3992_s8 + $0x60] sm:$0xff]  ;;  %v2855_v33 = vld [vmem:[%s3992_s8 + $0x48] sm:$0xff] }
 0xbf1   :  { %v1750_v39 = vunpack.c.l.b16 %v1712_v32  ;;  %v1715_v60 = vpack.c.bf16 %v1707_v51, %v1707_v51  ;;  %3097 = vrcp.f32 %v1672_v38  ;;  %v2856_v32 = vld [vmem:[%s3992_s8 + $0x50] sm:$0xff]  ;;  %v2854_v34 = vld [vmem:[%s3992_s8 + $0x40] sm:$0xff] }
 0xbf2   :  { %v1751_v43 = vunpack.c.l.b16 %v1713_v31  ;;  %v1816_v12 = vunpack.c.l.b16 %v1485_v40  ;;  %v1815_v44 = vunpack.c.l.b16 %v1484_v41  ;;  %v1714_v63 = vpack.c.bf16 %v1706_v55, %v1706_v55  ;;  %v3015_v55 = vld [vmem:[%s3991_s9 + $0x1] ss:$0 sm:$0xff] }
 0xbf3   :  { %v1781_v46 = vunpack.c.l.b16 %v1715_v60 }
 0xbf4   :  { %v1752_v47 = vpack.c.b16 %v1751_v43, %v1750_v39  ;;  %v1817_v42 = vpack.c.b16 %v1816_v12, %v1815_v44  ;;  %v1780_v3 = vunpack.c.l.b16 %v1714_v63 }
 0xbf6   :  { %2623 = vmatmul.msk.bf16.vlgmr.msra.gmra.mxu3 %vm604_vm11, %v1752_v47  ;;  %v1822_v52 = vsel %vm715_vm10, %v1817_v42, 0  ;;  %v1782_v25 = vpack.c.b16 %v1781_v46, %v1780_v3 }
 0xbf7   :  { %1831 = vmatpush.bf16.msrb.mxu1 %v1822_v52  ;;  %v3098_v27 = vpop.eup %3097 }
 0xbf8   :  { %v2983_v53 = vpop.permute.xlu0 %2982  ;;  %v1702_v6 = vmul.f32 %v3098_v27, %v3817_v56  ;;  %v2867_v27 = vld [vmem:[%s3996_s12 + $0x68] sm:$0xff] }
 0xbf9   :  { %v2985_v58 = vunpack.i.h.bf16 %v2983_v53  ;;  %v2984_v59 = vunpack.i.l.bf16 %v2983_v53 }
 0xbfa   :  { %2625 = vmatmul.msk.bf16.vlgmr.msrb.gmra.mxu1 %vm604_vm11, %v1812_v57  ;;  %v1710_v8 = vpack.c.bf16 %v1702_v6, %v1702_v6  ;;  %v2866_v6 = vld [vmem:[%s3996_s12 + $0x60] sm:$0xff] }
 0xbfb   :  { %v1483_v61 = vpack.c.bf16 %v2985_v58, %v2985_v58  ;;  %v1482_v62 = vpack.c.bf16 %v2984_v59, %v2984_v59 }
 0xbfc   :  { %v1720_v13 = vunpack.c.l.b16 %v1710_v8  ;;  %v2864_v8 = vld [vmem:[%s3996_s12 + $0x50] sm:$0xff] }
 0xbfd   :  { %v1786_v0 = vunpack.c.l.b16 %v1483_v61  ;;  %v1785_v1 = vunpack.c.l.b16 %v1482_v62 }
 0xbff   :  { %v1787_v2 = vpack.c.b16 %v1786_v0, %v1785_v1 }
 0xc01   :  { %v1792_v48 = vsel %vm715_vm10, %v1787_v2, 0 }
 0xc02   :  { %1801 = vmatpush.bf16.msra.mxu0 %v1792_v48 }
 0xc05   :  { %2624 = vmatmul.msk.bf16.vlgmr.msra.gmra.mxu0 %vm604_vm11, %v1782_v25 }
 0xc23   :  { %v1675_v5 = vpop.xlane.xlu0 %1674 }
 0xc24   :  { %3099 = vrcp.f32 %v1675_v5  ;;  %v2868_v5 = vld [vmem:[%s3996_s12 + $0x70] sm:$0xff] }
 0xc2a   :  { %v3100_v7 = vpop.eup %3099 }
 0xc2b   :  { %v1703_v9 = vmul.f32 %v3100_v7, %v3831_v10  ;;  %v2861_v10 = vld [vmem:[%s3992_s8 + $0x78] sm:$0xff] }
 0xc2c   :  { %1939 = vmatpush.bf16.msra.mxu2 %v2861_v10  ;;  %v2865_v7 = vld [vmem:[%s3996_s12 + $0x58] sm:$0xff] }
 0xc2d   :  { %v1711_v11 = vpack.c.bf16 %v1703_v9, %v1703_v9 }
 0xc2f   :  { %v1721_v14 = vunpack.c.l.b16 %v1711_v11 }
 0xc30   :  { %1940 = vmatpush.bf16.msra.mxu2 %v2860_v49 }
 0xc31   :  { %v1722_v15 = vpack.c.b16 %v1721_v14, %v1720_v13  ;;  %v2863_v13 = vld [vmem:[%s3996_s12 + $0x48] sm:$0xff] }
 0xc33   :  { %2622 = vmatmul.msk.bf16.vlgmr.msrb.gmra.mxu2 %vm604_vm11, %v1722_v15  ;;  %v2862_v15 = vld [vmem:[%s3996_s12 + $0x40] sm:$0xff] }
 0xc34   :  { %1941 = vmatpush.bf16.msra.mxu2 %v2859_v4 }
 0xc38   :  { %1942 = vmatpush.bf16.msra.mxu2 %v2858_v28 }
 0xc3c   :  { %1943 = vmatpush.bf16.msra.mxu2 %v2857_v30 }
 0xc40   :  { %1944 = vmatpush.bf16.msra.mxu2 %v2856_v32 }
 0xc44   :  { %1945 = vmatpush.bf16.msra.mxu2 %v2855_v33 }
 0xc48   :  { %1946 = vmatpush.bf16.msra.mxu2 %v2854_v34  ;;  %v3016_v34 = vld [vmem:[%s3993_s10 + $0x1] ss:$0 sm:$0xff] }
 0xc77   :  { %v1833_v19 = vpop.f32.mrf.mxu1 }
 0xc79   :  { %v1773_v17 = vpop.f32.mrf.mxu3 }
 0xc7f   :  { %v1835_v56 = vpop.f32.mrf.mxu1 }
 0xc80   :  { %v3001_v23 = vpack.i.bf16 %v1835_v56, %v1833_v19 }
 0xc81   :  { %v1775_v20 = vpop.f32.mrf.mxu3 }
 0xc82   :  { %v1803_v16 = vpop.f32.mrf.mxu0  ;;  %v2996_v22 = vpack.i.bf16 %v1775_v20, %v1773_v17 }
 0xc8a   :  { %v1805_v18 = vpop.f32.mrf.mxu0 }
 0xc8b   :  { %v2991_v54 = vpack.i.bf16 %v1805_v18, %v1803_v16 }
 0xc8d   :  { %2992 = vrot.lane.b32.xlu2 %v2991_v54, %s3114_s26 }
 0xc95   :  { %2997 = vrot.lane.b32.xlu2 %v2996_v22, %s3112_s25 }
 0xc9d   :  { %3002 = vrot.lane.b32.xlu2 %v3001_v23, %s3113_s4 }
 0xcb6   :  { %v1743_v31 = vpop.f32.mrf.mxu2 }
 0xcbe   :  { %v1745_v41 = vpop.f32.mrf.mxu2 }
 0xce7   :  { %v2993_v35 = vpop.permute.xlu2 %2992 }
 0xce8   :  { %v2995_v44 = vunpack.i.h.bf16 %v2993_v35  ;;  %v2994_v45 = vunpack.i.l.bf16 %v2993_v35 }
 0xcef   :  { %v2998_v36 = vpop.permute.xlu2 %2997 }
 0xcf0   :  { %v3000_v39 = vunpack.i.h.bf16 %v2998_v36  ;;  %v2999_v40 = vunpack.i.l.bf16 %v2998_v36 }
 0xcf2   :  { %v1863_v43 = vsel %vm477_vm9, %v1745_v41, %v3000_v39  ;;  %v1862_v12 = vsel %vm477_vm9, %v1743_v31, %v2999_v40  ;;  %v3017_v40 = vld [vmem:[%s3994_s11 + $0x1] ss:$0 sm:$0xff] }
 0xcf3   :  { %v1864_v42 = vsel %vm849_vm13, %v1862_v12, %v2994_v45  ;;  %v1865_v50 = vsel %vm849_vm13, %v1863_v43, %v2995_v44  ;;  %v2873_v45 = vld [vmem:[%s3998_s14 + $0x38] sm:$0xff] }
 0xcf4   :  { %2144 = vmatpush.bf16.msrb.mxu0 %v2873_v45 }
 0xcf7   :  { %v3003_v47 = vpop.permute.xlu2 %3002 }
 0xcf8   :  { %v3005_v29 = vunpack.i.h.bf16 %v3003_v47  ;;  %v3004_v37 = vunpack.i.l.bf16 %v3003_v47  ;;  %v2872_v47 = vld [vmem:[%s3998_s14 + $0x30] sm:$0xff] }
 0xcf9   :  { %2145 = vmatpush.bf16.msrb.mxu0 %v2872_v47 }
 0xcfa   :  { %v1867_v51 = vsel %vm852_vm14, %v1865_v50, %v3005_v29  ;;  %v1866_v52 = vsel %vm852_vm14, %v1864_v42, %v3004_v37  ;;  %v2871_v29 = vld [vmem:[%s3998_s14 + $0x28] sm:$0xff]  ;;  %v2870_v37 = vld [vmem:[%s3998_s14 + $0x20] sm:$0xff] }
 0xcfb   :  { %v1868_v53 = vpack.c.bf16 %v1867_v51, %v1866_v52  ;;  %v3018_v50 = vld [vmem:[%s3995_s13 + $0x1] ss:$0 sm:$0xff] }
 0xcfd   :  { %1947 = vmatmul.bf16.vlgmr.msra.gmra.mxu2 %v1868_v53  ;;  %2146 = vmatpush.bf16.msrb.mxu0 %v2871_v29  ;;  %v3022_v29 = vld [vmem:[%s4001_s19] ss:$0 sm:$0xff] }
 0xd01   :  { %2147 = vmatpush.bf16.msrb.mxu0 %v2870_v37 }
 0xd80   :  { %v1948_v57 = vpop.f32.mrf.mxu2 }
 0xd81   :  { %v1949_v58 = vadd.f32 %v3015_v55, %v1948_v57 }
 0xd83   :  { %v1953_v59 = vadd.f32 %v1949_v58, %v3760_v24 }
 0xd85   :  { %1959 = vadd.xlane.f32.xlu1 %v1953_v59 }
 0xd88   :  { %v1950_v60 = vpop.f32.mrf.mxu2 }
 0xd89   :  { %v1951_v61 = vadd.f32 %v3015_v55, %v1950_v60 }
 0xd8b   :  { %v1954_v62 = vadd.f32 %v1951_v61, %v3762_v26  ;;  %v2869_v26 = vld [vmem:[%s3996_s12 + $0x78] sm:$0xff] }
 0xd8c   :  { %2082 = vmatpush.bf16.msrb.mxu3 %v2869_v26 }
 0xd8d   :  { %v1961_v63 = vsel %vm82_vm0, %v1954_v62, 0.0 }
 0xd8e   :  { %1962 = vadd.xlane.f32.xlu2 %v1961_v63 }
 0xd90   :  { %2083 = vmatpush.bf16.msrb.mxu3 %v2868_v5 }
 0xd94   :  { %2084 = vmatpush.bf16.msrb.mxu3 %v2867_v27 }
 0xd98   :  { %2085 = vmatpush.bf16.msrb.mxu3 %v2866_v6  ;;  %v2881_v6 = vld [vmem:[%s4002_s18 + $0x38] sm:$0xff] }
 0xd99   :  { %2281 = vmatpush.bf16.msra.mxu1 %v2881_v6 }
 0xd9c   :  { %2086 = vmatpush.bf16.msrb.mxu3 %v2865_v7  ;;  %v2880_v7 = vld [vmem:[%s4002_s18 + $0x30] sm:$0xff] }
 0xd9d   :  { %2282 = vmatpush.bf16.msra.mxu1 %v2880_v7 }
 0xda0   :  { %2087 = vmatpush.bf16.msrb.mxu3 %v2864_v8  ;;  %v2879_v8 = vld [vmem:[%s4002_s18 + $0x28] sm:$0xff] }
 0xda1   :  { %2283 = vmatpush.bf16.msra.mxu1 %v2879_v8 }
 0xda4   :  { %2088 = vmatpush.bf16.msrb.mxu3 %v2863_v13  ;;  %v2876_v13 = vld [vmem:[%s4002_s18 + $0x10] sm:$0xff] }
 0xda8   :  { %2089 = vmatpush.bf16.msrb.mxu3 %v2862_v15 }
 0xdf8   :  { %v1960_v0 = vpop.xlane.xlu1 %1959 }
 0xdf9   :  { %v1964_v1 = vmul.f32 %v1960_v0, %v3249_v21 }
 0xdfb   :  { %v1966_v46 = vsub.f32 %v1953_v59, %v1964_v1  ;;  %v3019_v59 = vld [vmem:[%s3997_s15 + $0x1] ss:$0 sm:$0xff] }
 0xdfd   :  { %v1968_v2 = vmul.f32 %v1966_v46, %v1966_v46 }
 0xdff   :  { %1970 = vadd.xlane.f32.xlu1 %v1968_v2 }
 0xe01   :  { %v1963_v3 = vpop.xlane.xlu2 %1962 }
 0xe02   :  { %v1965_v48 = vmul.f32 %v1963_v3, %v3249_v21 }
 0xe04   :  { %v1967_v25 = vsub.f32 %v1954_v62, %v1965_v48 }
 0xe06   :  { %v1969_v38 = vmul.f32 %v1967_v25, %v1967_v25 }
 0xe08   :  { %v1972_v24 = vsel %vm82_vm0, %v1969_v38, 0.0 }
 0xe09   :  { %1973 = vadd.xlane.f32.xlu0 %v1972_v24 }
 0xe72   :  { %v1971_v9 = vpop.xlane.xlu1 %1970 }
 0xe73   :  { %v1975_v11 = vmul.f32 %v1971_v9, %v3249_v21  ;;  %v2878_v9 = vld [vmem:[%s4002_s18 + $0x20] sm:$0xff] }
 0xe74   :  { %2284 = vmatpush.bf16.msra.mxu1 %v2878_v9 }
 0xe75   :  { %v1977_v14 = vadd.f32 1e-05, %v1975_v11  ;;  %v2877_v11 = vld [vmem:[%s4002_s18 + $0x18] sm:$0xff] }
 0xe77   :  { %3101 = vrsqrt.f32 %v1977_v14  ;;  %vm1985_vm10 = vweird.f32 %v1977_v14 }
 0xe78   :  { %2285 = vmatpush.bf16.msra.mxu1 %v2877_v11 }
 0xe7c   :  { %v1974_v16 = vpop.xlane.xlu0 %1973  ;;  %2286 = vmatpush.bf16.msra.mxu1 %v2876_v13 }
 0xe7d   :  { %v3102_v17 = vpop.eup %3101  ;;  %v1976_v18 = vmul.f32 %v1974_v16, %v3249_v21  ;;  %v2875_v16 = vld [vmem:[%s4002_s18 + $0x8] sm:$0xff] }
 0xe7e   :  { %v1980_v54 = vmul.f32 %v3102_v17, %v1977_v14  ;;  %vm1986_vm9 = vweird.f32 %v3102_v17 }
 0xe7f   :  { %v1978_v19 = vadd.f32 1e-05, %v1976_v18  ;;  %vm1987_vm11 = vmor %vm1985_vm10, %vm1986_vm9  ;;  %v2874_v18 = vld [vmem:[%s4002_s18] sm:$0xff] }
 0xe80   :  { %v1981_v20 = vmul.f32 %v3102_v17, %v1980_v54  ;;  %2287 = vmatpush.bf16.msra.mxu1 %v2875_v16 }
 0xe81   :  { %3103 = vrsqrt.f32 %v1978_v19  ;;  %vm1995_vm14 = vweird.f32 %v1978_v19 }
 0xe82   :  { %v1982_v22 = vmul.f32 0.5, %v1981_v20 }
 0xe84   :  { %v1983_v56 = vsub.f32 1.5, %v1982_v22  ;;  %2288 = vmatpush.bf16.msra.mxu1 %v2874_v18 }
 0xe86   :  { %v1984_v10 = vmul.f32 %v3102_v17, %v1983_v56 }
 0xe87   :  { %v3104_v23 = vpop.eup %3103 }
 0xe88   :  { %v1990_v49 = vmul.f32 %v3104_v23, %v1978_v19  ;;  %v1988_v28 = vsel %vm1987_vm11, %v3102_v17, %v1984_v10  ;;  %vm1996_vm12 = vweird.f32 %v3104_v23 }
 0xe89   :  { %v1999_v33 = vmul.f32 %v1988_v28, %v1966_v46  ;;  %vm1997_vm3 = vmor %vm1995_vm14, %vm1996_vm12 }
 0xe8a   :  { %v1991_v4 = vmul.f32 %v3104_v23, %v1990_v49 }
 0xe8b   :  { %v2004_v39 = vmul.f32 %v3016_v34, %v1999_v33 }
 0xe8c   :  { %v1992_v30 = vmul.f32 0.5, %v1991_v4 }
 0xe8d   :  { %v2009_v43 = vadd.f32 %v3017_v40, %v2004_v39 }
 0xe8e   :  { %v1993_v32 = vsub.f32 1.5, %v1992_v30 }
 0xe90   :  { %v1994_v35 = vmul.f32 %v3104_v23, %v1993_v32 }
 0xe92   :  { %v1998_v31 = vsel %vm1997_vm3, %v3104_v23, %v1994_v35 }
 0xe93   :  { %v2000_v36 = vmul.f32 %v1998_v31, %v1967_v25 }
 0xe95   :  { %v2005_v41 = vmul.f32 %v3016_v34, %v2000_v36 }
 0xe97   :  { %v2010_v12 = vadd.f32 %v3017_v40, %v2005_v41 }
 0xe99   :  { %v2011_v44 = vpack.c.bf16 %v2010_v12, %v2009_v43 }
 0xe9b   :  { %2090 = vmatmul.bf16.vlgmr.msrb.gmra.mxu3 %v2011_v44 }
 0xf1e   :  { %v2091_v42 = vpop.f32.mrf.mxu3 }
 0xf1f   :  { %v2092_v51 = vadd.f32 %v3018_v50, %v2091_v42 }
 0xf21   :  { %v2096_v55 = vmax.f32 %v2092_v51, 0.0 }
 0xf26   :  { %v2093_v52 = vpop.f32.mrf.mxu3 }
 0xf27   :  { %v2094_v53 = vadd.f32 %v3018_v50, %v2093_v52 }
 0xf29   :  { %v2097_v57 = vmax.f32 %v2094_v53, 0.0 }
 0xf2b   :  { %v2098_v58 = vpack.c.bf16 %v2097_v57, %v2096_v55 }
 0xf2d   :  { %2751 = vmatmul.msk.bf16.vlgmr.msrb.gmra.mxu0 %vm849_vm13, %v2098_v58 }
 0xfaa   :  { %v2149_v60 = vpop.f32.mrf.mxu0 }
 0xfab   :  { %v2150_v61 = vadd.f32 %v3019_v59, %v2149_v60 }
 0xfad   :  { %v2154_v62 = vadd.f32 %v2150_v61, %v2009_v43  ;;  %v3021_v43 = vld [vmem:[%s4000_s17 + $0x1] ss:$0 sm:$0xff] }
 0xfaf   :  { %2160 = vadd.xlane.f32.xlu0 %v2154_v62 }
 0xfb2   :  { %v2151_v63 = vpop.f32.mrf.mxu0 }
 0xfb3   :  { %v2152_v0 = vadd.f32 %v3019_v59, %v2151_v63 }
 0xfb5   :  { %v2155_v1 = vadd.f32 %v2152_v0, %v2010_v12 }
 0xfb7   :  { %v2162_v46 = vsel %vm82_vm0, %v2155_v1, 0.0 }
 0xfb8   :  { %2163 = vadd.xlane.f32.xlu1 %v2162_v46 }
0x1022   :  { %v2161_v2 = vpop.xlane.xlu0 %2160 }
0x1023   :  { %v2165_v3 = vmul.f32 %v2161_v2, %v3249_v21 }
0x1025   :  { %v2167_v48 = vsub.f32 %v2154_v62, %v2165_v3 }
0x1027   :  { %v2169_v25 = vmul.f32 %v2167_v48, %v2167_v48 }
0x1029   :  { %2171 = vadd.xlane.f32.xlu1 %v2169_v25 }
0x102b   :  { %v2164_v38 = vpop.xlane.xlu1 %2163 }
0x102c   :  { %v2166_v24 = vmul.f32 %v2164_v38, %v3249_v21 }
0x102e   :  { %v2168_v26 = vsub.f32 %v2155_v1, %v2166_v24 }
0x1030   :  { %v2170_v5 = vmul.f32 %v2168_v26, %v2168_v26 }
0x1032   :  { %v2173_v27 = vsel %vm82_vm0, %v2170_v5, 0.0 }
0x1033   :  { %2174 = vadd.xlane.f32.xlu0 %v2173_v27 }
0x109c   :  { %v2172_v14 = vpop.xlane.xlu1 %2171 }
0x109d   :  { %v2176_v15 = vmul.f32 %v2172_v14, %v3249_v21 }
0x109f   :  { %v2178_v17 = vadd.f32 1e-05, %v2176_v15 }
0x10a1   :  { %3105 = vrsqrt.f32 %v2178_v17  ;;  %vm2186_vm13 = vweird.f32 %v2178_v17 }
0x10a6   :  { %v2175_v54 = vpop.xlane.xlu0 %2174 }
0x10a7   :  { %v3106_v19 = vpop.eup %3105  ;;  %v2177_v20 = vmul.f32 %v2175_v54, %v3249_v21  ;;  %v3020_v21 = vld [vmem:[%s3999_s16 + $0x1] ss:$0 sm:$0xff] }
0x10a8   :  { %v2181_v22 = vmul.f32 %v3106_v19, %v2178_v17  ;;  %vm2187_vm0 = vweird.f32 %v3106_v19 }
0x10a9   :  { %v2179_v56 = vadd.f32 1e-05, %v2177_v20  ;;  %vm2188_vm4 = vmor %vm2186_vm13, %vm2187_vm0 }
0x10aa   :  { %v2182_v23 = vmul.f32 %v3106_v19, %v2181_v22 }
0x10ab   :  { %3107 = vrsqrt.f32 %v2179_v56  ;;  %vm2196_vm6 = vweird.f32 %v2179_v56 }
0x10ac   :  { %v2183_v10 = vmul.f32 0.5, %v2182_v23 }
0x10ae   :  { %v2184_v49 = vsub.f32 1.5, %v2183_v10 }
0x10b0   :  { %v2185_v28 = vmul.f32 %v3106_v19, %v2184_v49 }
0x10b1   :  { %v3108_v4 = vpop.eup %3107 }
0x10b2   :  { %v2191_v30 = vmul.f32 %v3108_v4, %v2179_v56  ;;  %v2189_v33 = vsel %vm2188_vm4, %v3106_v19, %v2185_v28  ;;  %vm2197_vm5 = vweird.f32 %v3108_v4 }
0x10b3   :  { %v2200_v31 = vmul.f32 %v2189_v33, %v2167_v48  ;;  %vm2198_vm7 = vmor %vm2196_vm6, %vm2197_vm5 }
0x10b4   :  { %v2192_v32 = vmul.f32 %v3108_v4, %v2191_v30 }
0x10b5   :  { %v2205_v41 = vmul.f32 %v3020_v21, %v2200_v31 }
0x10b6   :  { %v2193_v34 = vmul.f32 0.5, %v2192_v32 }
0x10b7   :  { %v2210_v44 = vadd.f32 %v3021_v43, %v2205_v41 }
0x10b8   :  { %v2194_v35 = vsub.f32 1.5, %v2193_v34 }
0x10ba   :  { %v2195_v36 = vmul.f32 %v3108_v4, %v2194_v35 }
0x10bc   :  { %v2199_v39 = vsel %vm2198_vm7, %v3108_v4, %v2195_v36 }
0x10bd   :  { %v2201_v40 = vmul.f32 %v2199_v39, %v2168_v26 }
0x10bf   :  { %v2206_v12 = vmul.f32 %v3020_v21, %v2201_v40 }
0x10c1   :  { %v2211_v45 = vadd.f32 %v3021_v43, %v2206_v12 }
0x10c3   :  { %v2212_v47 = vpack.c.bf16 %v2211_v45, %v2210_v44 }
0x10c5   :  { %2289 = vmatmul.bf16.vlgmr.msra.gmra.mxu1 %v2212_v47 }
0x1142   :  { %v2290_v37 = vpop.f32.mrf.mxu1 }
0x1143   :  { %v2291_v42 = vadd.f32 %v3022_v29, %v2290_v37 }
0x1145   :  { %2295 = vst [vmem:[%s4003_s20] sm:$0xff] %v2291_v42 }
0x114a   :  { %v2292_v50 = vpop.f32.mrf.mxu1 }
0x114b   :  { %v2293_v51 = vadd.f32 %v3022_v29, %v2292_v50 }
0x114d   :  { %2296 = vst [vmem:[%s4003_s20 + $0x8] sm:$0xf] %v2293_v51 }

</bundles_post_ra>
